<compile_context>
chip_gen: v7x
topology: tpu7x:2x2x1
jax: 0.10.0
libtpu: 0.0.40
codegen_flags: <defaults>
</compile_context>

<pallas_src>
import functools

import jax
import jax.numpy as jnp
from jax.experimental import pallas as pl
from jax.experimental.pallas import tpu as pltpu


# --------------------------------------------------------------------------
# Shared helpers for the NCC kernels.
# --------------------------------------------------------------------------
_FUSED_PLANE_MAX = 1024   # fuse H and W box sums into one (H*W, H*W) banded matmul


def _band_matrix(n, r):
    """(n, n) 0/1 band matrix: band[i, j] = 1 iff |i - j| <= r.

    Right-multiplying a (..., n) array by it computes the 'same'-zero-padded
    length-(2r+1) box sum along that axis (padding is implicit in the band).
    """
    idx = jnp.arange(n)
    return (jnp.abs(idx[:, None] - idx[None, :]) <= r).astype(jnp.float32)


def _vmem_limit_bytes():
    """Explicit VMEM limit sized to the current chip (None -> compiler default)."""
    try:
        cap = int(pltpu.get_tpu_info().vmem_capacity_bytes)
        return min((cap * 3) // 4, 100 * 1024 * 1024)
    except Exception:
        return None


def _pick_d_tile(D, H, W, r, budget_bytes):
    """Largest D tile (divisor of D, multiple of 8 or == D) fitting the budget."""
    cands = [td for td in range(1, D + 1)
             if D % td == 0 and (td % 8 == 0 or td == D)]
    best = min(cands)
    for td in sorted(cands):
        est = 4 * H * W * (19 * td + 14 * r)   # rough live f32 working set
        if est <= budget_bytes:
            best = td
    return best


def _fetch_halos(i_hbm, j_hbm, ihlo, ihhi, jhlo, jhhi, sem,
                 *, n, dt, td, r, n_dtiles):
    """Fill the r-row D halos: DMA for interior tiles, zeros at volume edges."""
    if n_dtiles == 1:
        ihlo[...] = jnp.zeros_like(ihlo)
        jhlo[...] = jnp.zeros_like(jhlo)
        ihhi[...] = jnp.zeros_like(ihhi)
        jhhi[...] = jnp.zeros_like(jhhi)
        return

    lo_start = dt * td - r
    hi_start = (dt + 1) * td

    def _lo_copies():
        return (pltpu.make_async_copy(i_hbm.at[n, pl.ds(lo_start, r)], ihlo, sem.at[0, 0]),
                pltpu.make_async_copy(j_hbm.at[n, pl.ds(lo_start, r)], jhlo, sem.at[1, 0]))

    def _hi_copies():
        return (pltpu.make_async_copy(i_hbm.at[n, pl.ds(hi_start, r)], ihhi, sem.at[0, 1]),
                pltpu.make_async_copy(j_hbm.at[n, pl.ds(hi_start, r)], jhhi, sem.at[1, 1]))

    @pl.when(dt > 0)
    def _():
        for cp in _lo_copies():
            cp.start()

    @pl.when(dt < n_dtiles - 1)
    def _():
        for cp in _hi_copies():
            cp.start()

    @pl.when(dt == 0)
    def _():
        ihlo[...] = jnp.zeros_like(ihlo)
        jhlo[...] = jnp.zeros_like(jhlo)

    @pl.when(dt == n_dtiles - 1)
    def _():
        ihhi[...] = jnp.zeros_like(ihhi)
        jhhi[...] = jnp.zeros_like(jhhi)

    @pl.when(dt > 0)
    def _():
        for cp in _lo_copies():
            cp.wait()

    @pl.when(dt < n_dtiles - 1)
    def _():
        for cp in _hi_copies():
            cp.wait()


def _d_box_sum(fields, win, td):
    """'same'-padded box sum along the haloed D axis: (5, td+2r, ...) -> (5, td, ...)."""
    acc = fields[:, 0:td]
    for k in range(1, win):
        acc = acc + fields[:, k:k + td]
    return acc


def _cc_from_sums(i_sum, j_sum, i2_sum, j2_sum, ij_sum, *, win):
    """Same expansion as the PyTorch reference (compute_local_sums + cc)."""
    ws = float(win) ** 3
    u_i = i_sum / ws
    u_j = j_sum / ws
    cross = ij_sum - u_j * i_sum - u_i * j_sum + u_i * u_j * ws
    i_var = i2_sum - 2.0 * u_i * i_sum + u_i * u_i * ws
    j_var = j2_sum - 2.0 * u_j * j_sum + u_j * u_j * ws
    return cross * cross / (i_var * j_var + 1e-5)


# --------------------------------------------------------------------------
# NCC Pallas kernels.
# --------------------------------------------------------------------------
def _ncc_fused_kernel(kmat_ref, i_blk_ref, j_blk_ref, i_hbm, j_hbm, o_ref,
                      ihlo, ihhi, jhlo, jhhi, sem, *, win, n_dtiles):
    """NCC partial sum, lane-dense (..., H*W) layout; H/W box sums fused on the MXU."""
    n = pl.program_id(0)
    dt = pl.program_id(1)
    td = i_blk_ref.shape[1]
    r = win // 2

    _fetch_halos(i_hbm, j_hbm, ihlo, ihhi, jhlo, jhhi, sem,
                 n=n, dt=dt, td=td, r=r, n_dtiles=n_dtiles)

    i_win = jnp.concatenate([ihlo[...], i_blk_ref[0], ihhi[...]], axis=0)  # (td+2r, P)
    j_win = jnp.concatenate([jhlo[...], j_blk_ref[0], jhhi[...]], axis=0)

    fields = jnp.stack(
        [i_win, j_win, i_win * i_win, j_win * j_win, i_win * j_win], axis=0)
    acc = _d_box_sum(fields, win, td)                                      # (5, td, P)

    kmat = kmat_ref[...]
    i_sum = jnp.dot(acc[0], kmat, preferred_element_type=jnp.float32)
    j_sum = jnp.dot(acc[1], kmat, preferred_element_type=jnp.float32)
    i2_sum = jnp.dot(acc[2], kmat, preferred_element_type=jnp.float32)
    j2_sum = jnp.dot(acc[3], kmat, preferred_element_type=jnp.float32)
    ij_sum = jnp.dot(acc[4], kmat, preferred_element_type=jnp.float32)

    cc = _cc_from_sums(i_sum, j_sum, i2_sum, j2_sum, ij_sum, win=win)

    @pl.when(dt == 0)
    def _():
        o_ref[...] = jnp.zeros_like(o_ref)

    o_ref[...] = o_ref[...] + jnp.sum(cc)


def _ncc_general_kernel(bh_ref, bw_ref, i_blk_ref, j_blk_ref, i_hbm, j_hbm, o_ref,
                        ihlo, ihhi, jhlo, jhhi, sem, *, win, n_dtiles):
    """NCC partial sum for large planes: banded MXU matmuls along W then H."""
    n = pl.program_id(0)
    dt = pl.program_id(1)
    _, td, h, w = i_blk_ref.shape
    r = win // 2

    _fetch_halos(i_hbm, j_hbm, ihlo, ihhi, jhlo, jhhi, sem,
                 n=n, dt=dt, td=td, r=r, n_dtiles=n_dtiles)

    i_win = jnp.concatenate([ihlo[...], i_blk_ref[0], ihhi[...]], axis=0)  # (td+2r, H, W)
    j_win = jnp.concatenate([jhlo[...], j_blk_ref[0], jhhi[...]], axis=0)

    fields = jnp.stack(
        [i_win, j_win, i_win * i_win, j_win * j_win, i_win * j_win], axis=0)
    acc = _d_box_sum(fields, win, td)                                      # (5, td, H, W)

    bw = bw_ref[...]
    bh = bh_ref[...]
    sums = []
    for c in range(5):
        t = jnp.dot(acc[c].reshape(td * h, w), bw,
                    preferred_element_type=jnp.float32)                    # W box sum
        t = jnp.swapaxes(t.reshape(td, h, w), -1, -2)                      # (td, W, H)
        t = jnp.dot(t.reshape(td * w, h), bh,
                    preferred_element_type=jnp.float32)                    # H box sum
        sums.append(t)

    cc = _cc_from_sums(*sums, win=win)

    @pl.when(dt == 0)
    def _():
        o_ref[...] = jnp.zeros_like(o_ref)

    o_ref[...] = o_ref[...] + jnp.sum(cc)


def ncc_loss_pallas(I, J, win, d_tile=None):
    """Equivalent of ncc_loss.forward(I, J, win=[win]) for 3-D volumes."""
    B, C, D, H, W = I.shape
    N = B * C
    r = win // 2
    P = H * W

    vmem_limit = _vmem_limit_bytes()
    budget = (vmem_limit if vmem_limit is not None else 16 * 1024 * 1024) // 3
    td = d_tile if d_tile is not None else _pick_d_tile(D, H, W, r, budget)
    assert D % td == 0 and (td % 8 == 0 or td == D), "invalid D tile"
    n_dt = D // td

    Ix = I.reshape(N, D, H, W).astype(jnp.float32)
    Jx = J.reshape(N, D, H, W).astype(jnp.float32)

    fused = P <= _FUSED_PLANE_MAX
    if fused:
        # Lane-dense layout: H*W folded onto the lane axis (free reshape in HBM);
        # the H and W box sums become one banded kron matrix on the MXU.
        Ix = Ix.reshape(N, D, P)
        Jx = Jx.reshape(N, D, P)
        band_arrays = (jnp.kron(_band_matrix(H, r), _band_matrix(W, r)),)
        band_specs = [pl.BlockSpec((P, P), lambda n, d: (0, 0))]
        blk_spec = pl.BlockSpec((1, td, P), lambda n, d: (n, d, 0))
        halo_shape = (r, P)
        kernel = functools.partial(_ncc_fused_kernel, win=win, n_dtiles=n_dt)
    else:
        band_arrays = (_band_matrix(H, r), _band_matrix(W, r))
        band_specs = [pl.BlockSpec((H, H), lambda n, d: (0, 0)),
                      pl.BlockSpec((W, W), lambda n, d: (0, 0))]
        blk_spec = pl.BlockSpec((1, td, H, W), lambda n, d: (n, d, 0, 0))
        halo_shape = (r, H, W)
        kernel = functools.partial(_ncc_general_kernel, win=win, n_dtiles=n_dt)

    in_specs = band_specs + [
        blk_spec,                              # I: auto-pipelined D tile
        blk_spec,                              # J: auto-pipelined D tile
        pl.BlockSpec(memory_space=pl.ANY),     # I again (raw HBM) for the halo DMAs
        pl.BlockSpec(memory_space=pl.ANY),     # J again (raw HBM) for the halo DMAs
    ]

    partials = pl.pallas_call(
        kernel,
        out_shape=jax.ShapeDtypeStruct((N, 1, 128), jnp.float32),
        grid_spec=pltpu.PrefetchScalarGridSpec(
            num_scalar_prefetch=0,
            grid=(N, n_dt),
            in_specs=in_specs,
            out_specs=pl.BlockSpec((1, 1, 128), lambda n, d: (n, 0, 0)),
            scratch_shapes=[
                pltpu.VMEM(halo_shape, jnp.float32),   # I lower halo
                pltpu.VMEM(halo_shape, jnp.float32),   # I upper halo
                pltpu.VMEM(halo_shape, jnp.float32),   # J lower halo
                pltpu.VMEM(halo_shape, jnp.float32),   # J upper halo
                pltpu.SemaphoreType.DMA((2, 2)),
            ],
        ),
        compiler_params=pltpu.CompilerParams(
            dimension_semantics=("parallel", "arbitrary"),
            vmem_limit_bytes=vmem_limit,
        ),
    )(*band_arrays, Ix, Jx, Ix, Jx)

    cc_sum = jnp.sum(partials[:, 0, 0])
    return -(cc_sum / float(N * D * H * W))


# --------------------------------------------------------------------------
# Gradient (smoothness) loss kernel.
# --------------------------------------------------------------------------
def _grad_kernel(s_ref, o_ref, *, inv_counts):
    """Per-n partial of the l2 gradient penalty (matches gradient_loss.forward)."""
    x = s_ref[...]                                     # (1, D, H, W)
    w = x.shape[-1]

    dd = x[:, 1:, :, :] - x[:, :-1, :, :]              # diff along D (torch dy)
    dh = x[:, :, 1:, :] - x[:, :, :-1, :]              # diff along H (torch dx)
    # Lane-axis diff kept full-width (shift + mask) to avoid narrow masked slices.
    x_next = jnp.roll(x, shift=-1, axis=-1)
    lane = jax.lax.broadcasted_iota(jnp.int32, x.shape, 3)
    dw = jnp.where(lane < w - 1, x_next - x, 0.0)      # diff along W (torch dz)

    val = (jnp.sum(dd * dd) * inv_counts[0]
           + jnp.sum(dh * dh) * inv_counts[1]
           + jnp.sum(dw * dw) * inv_counts[2]) / 3.0
    o_ref[...] = jnp.zeros_like(o_ref) + val


def gradient_loss_pallas(s):
    """Equivalent of gradient_loss.forward(s, penalty='l2')."""
    B, C, D, H, W = s.shape
    N = B * C
    x = s.reshape(N, D, H, W).astype(jnp.float32)
    inv_counts = (
        1.0 / float(N * (D - 1) * H * W),
        1.0 / float(N * D * (H - 1) * W),
        1.0 / float(N * D * H * (W - 1)),
    )
    partials = pl.pallas_call(
        functools.partial(_grad_kernel, inv_counts=inv_counts),
        out_shape=jax.ShapeDtypeStruct((N, 1, 128), jnp.float32),
        grid_spec=pltpu.PrefetchScalarGridSpec(
            num_scalar_prefetch=0,
            grid=(N,),
            in_specs=[pl.BlockSpec((1, D, H, W), lambda n: (n, 0, 0, 0))],
            out_specs=pl.BlockSpec((1, 1, 128), lambda n: (n, 0, 0)),
        ),
        compiler_params=pltpu.CompilerParams(dimension_semantics=("parallel",)),
    )(x)
    return jnp.sum(partials[:, 0, 0])


# --------------------------------------------------------------------------
# Plain-JAX glue for the multi-scale branch.
# TODO(synk): ResizeTransform / SpatialTransformer are not defined in losses.py;
#             standard VoxelMorph semantics are assumed (trilinear resize with the
#             values scaled by the factor, trilinear warp with clamped coords).
# --------------------------------------------------------------------------
def resize_transform(x, vel_resize):
    factor = 1.0 / vel_resize
    B, C, D, H, W = x.shape
    new_shape = (B, C, int(D * factor), int(H * factor), int(W * factor))
    x = jax.image.resize(x, new_shape, method="trilinear")
    return factor * x


def _warp_one(vol, flw):
    # vol: [C, D, H, W]; flw: [3, D, H, W] (displacements along D, H, W)
    C, D, H, W = vol.shape
    dt = vol.dtype
    gd, gh, gw = jnp.meshgrid(
        jnp.arange(D, dtype=dt), jnp.arange(H, dtype=dt), jnp.arange(W, dtype=dt),
        indexing="ij")
    ld = jnp.clip(gd + flw[0], 0.0, D - 1.0)
    lh = jnp.clip(gh + flw[1], 0.0, H - 1.0)
    lw = jnp.clip(gw + flw[2], 0.0, W - 1.0)
    d0 = jnp.floor(ld).astype(jnp.int32); d1 = jnp.minimum(d0 + 1, D - 1)
    h0 = jnp.floor(lh).astype(jnp.int32); h1 = jnp.minimum(h0 + 1, H - 1)
    w0 = jnp.floor(lw).astype(jnp.int32); w1 = jnp.minimum(w0 + 1, W - 1)
    fd = ld - d0
    fh = lh - h0
    fw = lw - w0

    def g(di, hi, wi):
        return vol[:, di, hi, wi]

    return (g(d0, h0, w0) * (1 - fd) * (1 - fh) * (1 - fw)
            + g(d0, h0, w1) * (1 - fd) * (1 - fh) * fw
            + g(d0, h1, w0) * (1 - fd) * fh * (1 - fw)
            + g(d0, h1, w1) * (1 - fd) * fh * fw
            + g(d1, h0, w0) * fd * (1 - fh) * (1 - fw)
            + g(d1, h0, w1) * fd * (1 - fh) * fw
            + g(d1, h1, w0) * fd * fh * (1 - fw)
            + g(d1, h1, w1) * fd * fh * fw)


def spatial_transform(vol, flow):
    return jax.vmap(_warp_one)(vol, flow)


def multi_loss_ncc(src, tgt, flow1, refine_flow1, flow2, refine_flow2, h3, h4):
    # refine_flow1 / refine_flow2 are unused in the reference forward as well.
    z1_tgt = resize_transform(tgt, 2)
    z1_src = resize_transform(src, 2)
    warped1 = spatial_transform(z1_src, flow1)
    loss = h3 * ncc_loss_pallas(warped1, z1_tgt, win=7)

    z2_tgt = resize_transform(tgt, 4)
    z2_src = resize_transform(src, 4)
    warped2 = spatial_transform(z2_src, flow2)
    loss = loss + h4 * ncc_loss_pallas(warped2, z2_tgt, win=5)
    return loss


def loss_function_mpr_ncc(y, tgt, src, flow, flow1, refine_flow1, flow2,
                          refine_flow2, hyper_1, hyper_2, hyper_3, hyper_4):
    ncc_v = ncc_loss_pallas(tgt, y, win=9)
    grad_v = gradient_loss_pallas(flow)
    multi = multi_loss_ncc(src, tgt, flow1, refine_flow1, flow2, refine_flow2,
                           hyper_3, hyper_4)
    loss = multi + hyper_1 * ncc_v + hyper_2 * grad_v
    return loss, ncc_v, grad_v


# --------------------------------------------------------------------------
if __name__ == "__main__":
    key = jax.random.PRNGKey(0)
    ks = jax.random.split(key, 8)
    B, D, H, W = 2, 16, 16, 16

    y = jax.random.normal(ks[0], (B, 1, D, H, W), jnp.float32)
    tgt = jax.random.normal(ks[1], (B, 1, D, H, W), jnp.float32)
    src = jax.random.normal(ks[2], (B, 1, D, H, W), jnp.float32)
    flow = jax.random.normal(ks[3], (B, 3, D, H, W), jnp.float32)
    flow1 = 0.5 * jax.random.normal(ks[4], (B, 3, D // 2, H // 2, W // 2), jnp.float32)
    refine_flow1 = jax.random.normal(ks[5], (B, 3, D // 2, H // 2, W // 2), jnp.float32)
    flow2 = 0.5 * jax.random.normal(ks[6], (B, 3, D // 4, H // 4, W // 4), jnp.float32)
    refine_flow2 = jax.random.normal(ks[7], (B, 3, D // 4, H // 4, W // 4), jnp.float32)

    hyper_1, hyper_2, hyper_3, hyper_4 = 1.0, 0.5, 0.25, 0.125

    loss, ncc_v, grad_v = loss_function_mpr_ncc(
        y, tgt, src, flow, flow1, refine_flow1, flow2, refine_flow2,
        hyper_1, hyper_2, hyper_3, hyper_4)

    # Also exercise the multi-D-tile (halo DMA) path of the NCC kernel.
    ncc_tiled = ncc_loss_pallas(tgt, y, win=9, d_tile=8)

    jax.block_until_ready((loss, ncc_v, grad_v, ncc_tiled))
    print("KERNEL_OK")
</pallas_src>

<mosaic_0001>
module attributes {stable_mosaic.version = 11 : i64} {
  func.func @_ncc_fused_kernel(%arg0: i32, %arg1: i32, %arg2: memref<256x256xf32, #tpu.memory_space<vmem>>, %arg3: memref<1x16x256xf32, #tpu.memory_space<vmem>>, %arg4: memref<1x16x256xf32, #tpu.memory_space<vmem>>, %arg5: memref<2x16x256xf32, #tpu.memory_space<any>>, %arg6: memref<2x16x256xf32, #tpu.memory_space<any>>, %arg7: memref<1x1x128xf32, #tpu.memory_space<vmem>>, %arg8: memref<4x256xf32, #tpu.memory_space<vmem>>, %arg9: memref<4x256xf32, #tpu.memory_space<vmem>>, %arg10: memref<4x256xf32, #tpu.memory_space<vmem>>, %arg11: memref<4x256xf32, #tpu.memory_space<vmem>>, %arg12: memref<2x2x!tpu.dma_semaphore, #tpu.memory_space<semaphore_mem>>) attributes {dimension_semantics = [#tpu.dimension_semantics<parallel>, #tpu.dimension_semantics<arbitrary>], iteration_bounds = array<i64: 2, 1>, scalar_prefetch = 0 : i64, scratch_operands = 5 : i64, tpu.core_type = #tpu.core_type<tc>, window_params = [{pipeline_mode = #tpu.pipeline_mode<synchronous>, transform_indices = @transform_0, window_bounds = array<i64: 256, 256>}, {transform_indices = @transform_1, window_bounds = array<i64: 1, 16, 256>}, {transform_indices = @transform_2, window_bounds = array<i64: 1, 16, 256>}, {}, {}, {transform_indices = @transform_5, window_bounds = array<i64: 1, 1, 128>}]} {
    %cst = arith.constant 0.000000e+00 : f32
    %0 = vector.broadcast %cst : f32 to vector<4x256xf32>
    %c0 = arith.constant 0 : index
    %c0_0 = arith.constant 0 : index
    %1 = vector.load %arg8[%c0, %c0_0] : memref<4x256xf32, #tpu.memory_space<vmem>>, vector<4x256xf32>
    tpu.vector_store %arg8[%c0, %c0_0], %0 {strides = array<i32>} : memref<4x256xf32, #tpu.memory_space<vmem>>, vector<4x256xf32>,
    %cst_1 = arith.constant 0.000000e+00 : f32
    %2 = vector.broadcast %cst_1 : f32 to vector<4x256xf32>
    %c0_2 = arith.constant 0 : index
    %c0_3 = arith.constant 0 : index
    %3 = vector.load %arg10[%c0_2, %c0_3] : memref<4x256xf32, #tpu.memory_space<vmem>>, vector<4x256xf32>
    tpu.vector_store %arg10[%c0_2, %c0_3], %2 {strides = array<i32>} : memref<4x256xf32, #tpu.memory_space<vmem>>, vector<4x256xf32>,
    %cst_4 = arith.constant 0.000000e+00 : f32
    %4 = vector.broadcast %cst_4 : f32 to vector<4x256xf32>
    %c0_5 = arith.constant 0 : index
    %c0_6 = arith.constant 0 : index
    %5 = vector.load %arg9[%c0_5, %c0_6] : memref<4x256xf32, #tpu.memory_space<vmem>>, vector<4x256xf32>
    tpu.vector_store %arg9[%c0_5, %c0_6], %4 {strides = array<i32>} : memref<4x256xf32, #tpu.memory_space<vmem>>, vector<4x256xf32>,
    %cst_7 = arith.constant 0.000000e+00 : f32
    %6 = vector.broadcast %cst_7 : f32 to vector<4x256xf32>
    %c0_8 = arith.constant 0 : index
    %c0_9 = arith.constant 0 : index
    %7 = vector.load %arg11[%c0_8, %c0_9] : memref<4x256xf32, #tpu.memory_space<vmem>>, vector<4x256xf32>
    tpu.vector_store %arg11[%c0_8, %c0_9], %6 {strides = array<i32>} : memref<4x256xf32, #tpu.memory_space<vmem>>, vector<4x256xf32>,
    %c0_10 = arith.constant 0 : index
    %c0_11 = arith.constant 0 : index
    %8 = vector.load %arg8[%c0_10, %c0_11] : memref<4x256xf32, #tpu.memory_space<vmem>>, vector<4x256xf32>
    %c0_12 = arith.constant 0 : index
    %c0_13 = arith.constant 0 : index
    %c0_14 = arith.constant 0 : index
    %9 = vector.load %arg3[%c0_12, %c0_13, %c0_14] : memref<1x16x256xf32, #tpu.memory_space<vmem>>, vector<1x16x256xf32>
    %10 = vector.shape_cast %9 : vector<1x16x256xf32> to vector<16x256xf32>
    %c0_15 = arith.constant 0 : index
    %c0_16 = arith.constant 0 : index
    %11 = vector.load %arg9[%c0_15, %c0_16] : memref<4x256xf32, #tpu.memory_space<vmem>>, vector<4x256xf32>
    %12 = tpu.concatenate %8, %10, %11 in 0 : vector<4x256xf32>, vector<16x256xf32>, vector<4x256xf32> -> vector<24x256xf32>
    %c0_17 = arith.constant 0 : index
    %c0_18 = arith.constant 0 : index
    %13 = vector.load %arg10[%c0_17, %c0_18] : memref<4x256xf32, #tpu.memory_space<vmem>>, vector<4x256xf32>
    %c0_19 = arith.constant 0 : index
    %c0_20 = arith.constant 0 : index
    %c0_21 = arith.constant 0 : index
    %14 = vector.load %arg4[%c0_19, %c0_20, %c0_21] : memref<1x16x256xf32, #tpu.memory_space<vmem>>, vector<1x16x256xf32>
    %15 = vector.shape_cast %14 : vector<1x16x256xf32> to vector<16x256xf32>
    %c0_22 = arith.constant 0 : index
    %c0_23 = arith.constant 0 : index
    %16 = vector.load %arg11[%c0_22, %c0_23] : memref<4x256xf32, #tpu.memory_space<vmem>>, vector<4x256xf32>
    %17 = tpu.concatenate %13, %15, %16 in 0 : vector<4x256xf32>, vector<16x256xf32>, vector<4x256xf32> -> vector<24x256xf32>
    %18 = arith.mulf %12, %12 : vector<24x256xf32>
    %19 = arith.mulf %17, %17 : vector<24x256xf32>
    %20 = arith.mulf %12, %17 : vector<24x256xf32>
    %21 = vector.shape_cast %12 : vector<24x256xf32> to vector<1x24x256xf32>
    %22 = vector.shape_cast %17 : vector<24x256xf32> to vector<1x24x256xf32>
    %23 = vector.shape_cast %18 : vector<24x256xf32> to vector<1x24x256xf32>
    %24 = vector.shape_cast %19 : vector<24x256xf32> to vector<1x24x256xf32>
    %25 = vector.shape_cast %20 : vector<24x256xf32> to vector<1x24x256xf32>
    %26 = tpu.concatenate %21, %22, %23, %24, %25 in 0 : vector<1x24x256xf32>, vector<1x24x256xf32>, vector<1x24x256xf32>, vector<1x24x256xf32>, vector<1x24x256xf32> -> vector<5x24x256xf32>
    %27 = vector.extract_strided_slice %26 {offsets = [0, 0, 0], sizes = [5, 16, 256], strides = [1, 1, 1]} : vector<5x24x256xf32> to vector<5x16x256xf32>
    %28 = vector.extract_strided_slice %26 {offsets = [0, 1, 0], sizes = [5, 16, 256], strides = [1, 1, 1]} : vector<5x24x256xf32> to vector<5x16x256xf32>
    %29 = arith.addf %27, %28 : vector<5x16x256xf32>
    %30 = vector.extract_strided_slice %26 {offsets = [0, 2, 0], sizes = [5, 16, 256], strides = [1, 1, 1]} : vector<5x24x256xf32> to vector<5x16x256xf32>
    %31 = arith.addf %29, %30 : vector<5x16x256xf32>
    %32 = vector.extract_strided_slice %26 {offsets = [0, 3, 0], sizes = [5, 16, 256], strides = [1, 1, 1]} : vector<5x24x256xf32> to vector<5x16x256xf32>
    %33 = arith.addf %31, %32 : vector<5x16x256xf32>
    %34 = vector.extract_strided_slice %26 {offsets = [0, 4, 0], sizes = [5, 16, 256], strides = [1, 1, 1]} : vector<5x24x256xf32> to vector<5x16x256xf32>
    %35 = arith.addf %33, %34 : vector<5x16x256xf32>
    %36 = vector.extract_strided_slice %26 {offsets = [0, 5, 0], sizes = [5, 16, 256], strides = [1, 1, 1]} : vector<5x24x256xf32> to vector<5x16x256xf32>
    %37 = arith.addf %35, %36 : vector<5x16x256xf32>
    %38 = vector.extract_strided_slice %26 {offsets = [0, 6, 0], sizes = [5, 16, 256], strides = [1, 1, 1]} : vector<5x24x256xf32> to vector<5x16x256xf32>
    %39 = arith.addf %37, %38 : vector<5x16x256xf32>
    %40 = vector.extract_strided_slice %26 {offsets = [0, 7, 0], sizes = [5, 16, 256], strides = [1, 1, 1]} : vector<5x24x256xf32> to vector<5x16x256xf32>
    %41 = arith.addf %39, %40 : vector<5x16x256xf32>
    %42 = vector.extract_strided_slice %26 {offsets = [0, 8, 0], sizes = [5, 16, 256], strides = [1, 1, 1]} : vector<5x24x256xf32> to vector<5x16x256xf32>
    %43 = arith.addf %41, %42 : vector<5x16x256xf32>
    %c0_24 = arith.constant 0 : index
    %c0_25 = arith.constant 0 : index
    %44 = vector.load %arg2[%c0_24, %c0_25] : memref<256x256xf32, #tpu.memory_space<vmem>>, vector<256x256xf32>
    %45 = vector.extract_strided_slice %43 {offsets = [0, 0, 0], sizes = [1, 16, 256], strides = [1, 1, 1]} : vector<5x16x256xf32> to vector<1x16x256xf32>
    %46 = vector.shape_cast %45 : vector<1x16x256xf32> to vector<16x256xf32>
    %cst_26 = arith.constant dense<0.000000e+00> : vector<16x256xf32>
    %47 = tpu.matmul %46, %44, %cst_26 {dimension_numbers = #tpu.dot_dimension_numbers<[1], [0], [0], [1], [0, 0, 1, 1], [], []>} : vector<16x256xf32>, vector<256x256xf32>, vector<16x256xf32> -> vector<16x256xf32>
    %48 = vector.extract_strided_slice %43 {offsets = [1, 0, 0], sizes = [1, 16, 256], strides = [1, 1, 1]} : vector<5x16x256xf32> to vector<1x16x256xf32>
    %49 = vector.shape_cast %48 : vector<1x16x256xf32> to vector<16x256xf32>
    %cst_27 = arith.constant dense<0.000000e+00> : vector<16x256xf32>
    %50 = tpu.matmul %49, %44, %cst_27 {dimension_numbers = #tpu.dot_dimension_numbers<[1], [0], [0], [1], [0, 0, 1, 1], [], []>} : vector<16x256xf32>, vector<256x256xf32>, vector<16x256xf32> -> vector<16x256xf32>
    %51 = vector.extract_strided_slice %43 {offsets = [2, 0, 0], sizes = [1, 16, 256], strides = [1, 1, 1]} : vector<5x16x256xf32> to vector<1x16x256xf32>
    %52 = vector.shape_cast %51 : vector<1x16x256xf32> to vector<16x256xf32>
    %cst_28 = arith.constant dense<0.000000e+00> : vector<16x256xf32>
    %53 = tpu.matmul %52, %44, %cst_28 {dimension_numbers = #tpu.dot_dimension_numbers<[1], [0], [0], [1], [0, 0, 1, 1], [], []>} : vector<16x256xf32>, vector<256x256xf32>, vector<16x256xf32> -> vector<16x256xf32>
    %54 = vector.extract_strided_slice %43 {offsets = [3, 0, 0], sizes = [1, 16, 256], strides = [1, 1, 1]} : vector<5x16x256xf32> to vector<1x16x256xf32>
    %55 = vector.shape_cast %54 : vector<1x16x256xf32> to vector<16x256xf32>
    %cst_29 = arith.constant dense<0.000000e+00> : vector<16x256xf32>
    %56 = tpu.matmul %55, %44, %cst_29 {dimension_numbers = #tpu.dot_dimension_numbers<[1], [0], [0], [1], [0, 0, 1, 1], [], []>} : vector<16x256xf32>, vector<256x256xf32>, vector<16x256xf32> -> vector<16x256xf32>
    %57 = vector.extract_strided_slice %43 {offsets = [4, 0, 0], sizes = [1, 16, 256], strides = [1, 1, 1]} : vector<5x16x256xf32> to vector<1x16x256xf32>
    %58 = vector.shape_cast %57 : vector<1x16x256xf32> to vector<16x256xf32>
    %cst_30 = arith.constant dense<0.000000e+00> : vector<16x256xf32>
    %59 = tpu.matmul %58, %44, %cst_30 {dimension_numbers = #tpu.dot_dimension_numbers<[1], [0], [0], [1], [0, 0, 1, 1], [], []>} : vector<16x256xf32>, vector<256x256xf32>, vector<16x256xf32> -> vector<16x256xf32>
    %cst_31 = arith.constant 7.290000e+02 : f32
    %60 = vector.broadcast %cst_31 : f32 to vector<16x256xf32>
    %61 = arith.divf %47, %60 : vector<16x256xf32>
    %cst_32 = arith.constant 7.290000e+02 : f32
    %62 = vector.broadcast %cst_32 : f32 to vector<16x256xf32>
    %63 = arith.divf %50, %62 : vector<16x256xf32>
    %64 = arith.mulf %63, %47 : vector<16x256xf32>
    %65 = arith.subf %59, %64 : vector<16x256xf32>
    %66 = arith.mulf %61, %50 : vector<16x256xf32>
    %67 = arith.subf %65, %66 : vector<16x256xf32>
    %68 = arith.mulf %61, %63 : vector<16x256xf32>
    %cst_33 = arith.constant 7.290000e+02 : f32
    %69 = vector.broadcast %cst_33 : f32 to vector<16x256xf32>
    %70 = arith.mulf %68, %69 : vector<16x256xf32>
    %71 = arith.addf %67, %70 : vector<16x256xf32>
    %cst_34 = arith.constant 2.000000e+00 : f32
    %72 = vector.broadcast %cst_34 : f32 to vector<16x256xf32>
    %73 = arith.mulf %72, %61 : vector<16x256xf32>
    %74 = arith.mulf %73, %47 : vector<16x256xf32>
    %75 = arith.subf %53, %74 : vector<16x256xf32>
    %76 = arith.mulf %61, %61 : vector<16x256xf32>
    %cst_35 = arith.constant 7.290000e+02 : f32
    %77 = vector.broadcast %cst_35 : f32 to vector<16x256xf32>
    %78 = arith.mulf %76, %77 : vector<16x256xf32>
    %79 = arith.addf %75, %78 : vector<16x256xf32>
    %cst_36 = arith.constant 2.000000e+00 : f32
    %80 = vector.broadcast %cst_36 : f32 to vector<16x256xf32>
    %81 = arith.mulf %80, %63 : vector<16x256xf32>
    %82 = arith.mulf %81, %50 : vector<16x256xf32>
    %83 = arith.subf %56, %82 : vector<16x256xf32>
    %84 = arith.mulf %63, %63 : vector<16x256xf32>
    %cst_37 = arith.constant 7.290000e+02 : f32
    %85 = vector.broadcast %cst_37 : f32 to vector<16x256xf32>
    %86 = arith.mulf %84, %85 : vector<16x256xf32>
    %87 = arith.addf %83, %86 : vector<16x256xf32>
    %88 = arith.mulf %71, %71 : vector<16x256xf32>
    %89 = arith.mulf %79, %87 : vector<16x256xf32>
    %cst_38 = arith.constant 9.99999974E-6 : f32
    %90 = vector.broadcast %cst_38 : f32 to vector<16x256xf32>
    %91 = arith.addf %89, %90 : vector<16x256xf32>
    %92 = arith.divf %88, %91 : vector<16x256xf32>
    %c0_i32 = arith.constant 0 : i32
    %93 = arith.cmpi eq, %arg1, %c0_i32 : i32
    %94 = arith.extui %93 : i1 to i32
    %c0_i32_39 = arith.constant 0 : i32
    %95 = arith.cmpi ne, %94, %c0_i32_39 : i32
    scf.if %95 {
      %cst_47 = arith.constant 0.000000e+00 : f32
      %104 = vector.broadcast %cst_47 : f32 to vector<1x1x128xf32>
      %c0_48 = arith.constant 0 : index
      %c0_49 = arith.constant 0 : index
      %c0_50 = arith.constant 0 : index
      %105 = vector.load %arg7[%c0_48, %c0_49, %c0_50] : memref<1x1x128xf32, #tpu.memory_space<vmem>>, vector<1x1x128xf32>
      tpu.vector_store %arg7[%c0_48, %c0_49, %c0_50], %104 {strides = array<i32>} : memref<1x1x128xf32, #tpu.memory_space<vmem>>, vector<1x1x128xf32>,
    } else {
    }
    %c0_40 = arith.constant 0 : index
    %c0_41 = arith.constant 0 : index
    %c0_42 = arith.constant 0 : index
    %96 = vector.load %arg7[%c0_40, %c0_41, %c0_42] : memref<1x1x128xf32, #tpu.memory_space<vmem>>, vector<1x1x128xf32>
    %97 = vector.shape_cast %92 : vector<16x256xf32> to vector<1x16x256xf32>
    %cst_43 = arith.constant dense<0.000000e+00> : vector<1xf32>
    %98 = vector.multi_reduction <add>, %97, %cst_43 [1, 2] : vector<1x16x256xf32> to vector<1xf32>
    %99 = vector.shape_cast %98 : vector<1xf32> to vector<1x1x1xf32>
    %100 = vector.extract %99[0, 0, 0] : f32 from vector<1x1x1xf32>
    %101 = vector.broadcast %100 : f32 to vector<1x1x128xf32>
    %102 = arith.addf %96, %101 : vector<1x1x128xf32>
    %c0_44 = arith.constant 0 : index
    %c0_45 = arith.constant 0 : index
    %c0_46 = arith.constant 0 : index
    %103 = vector.load %arg7[%c0_44, %c0_45, %c0_46] : memref<1x1x128xf32, #tpu.memory_space<vmem>>, vector<1x1x128xf32>
    tpu.vector_store %arg7[%c0_44, %c0_45, %c0_46], %102 {strides = array<i32>} : memref<1x1x128xf32, #tpu.memory_space<vmem>>, vector<1x1x128xf32>,
    return
  }
  func.func @transform_0(%arg0: i32, %arg1: i32) -> (i32, i32) {
    %c0_i32 = arith.constant 0 : i32
    %c0_i32_0 = arith.constant 0 : i32
    %c0_i32_1 = arith.constant 0 : i32
    return %c0_i32, %c0_i32_0 : i32, i32
  }
  func.func @transform_1(%arg0: i32, %arg1: i32) -> (i32, i32, i32) {
    %c0_i32 = arith.constant 0 : i32
    %c0_i32_0 = arith.constant 0 : i32
    return %arg0, %arg1, %c0_i32 : i32, i32, i32
  }
  func.func @transform_2(%arg0: i32, %arg1: i32) -> (i32, i32, i32) {
    %c0_i32 = arith.constant 0 : i32
    %c0_i32_0 = arith.constant 0 : i32
    return %arg0, %arg1, %c0_i32 : i32, i32, i32
  }
  func.func @transform_5(%arg0: i32, %arg1: i32) -> (i32, i32, i32) {
    %c0_i32 = arith.constant 0 : i32
    %c0_i32_0 = arith.constant 0 : i32
    %c0_i32_1 = arith.constant 0 : i32
    return %arg0, %c0_i32, %c0_i32_0 : i32, i32, i32
  }
}

</mosaic_0001>

<bundles_post_ra>
// kernel: tpu_custom_call.1
= control target key start
LH: loop header
LB: loop body
LE: loop exit
PB: predicated region body
PF: predicated region fallthrough
CT: control target
= control target key end

     0   :  { %10 = vsyncpa [#allocation8], 0  ;;  %s3789_s0 = inlined_call_operand.hbm [shape: f32[256,256], index: 0, kind: input, shape index: {}]   ;;  %s3790_s1 = inlined_call_operand.hbm [shape: f32[2,16,256], index: 1, kind: input, shape index: {}]   ;;  %s3791_s2 = inlined_call_operand.hbm [shape: f32[2,16,256], index: 2, kind: input, shape index: {}]   ;;  %s3792_s3 = inlined_call_operand.hbm [shape: f32[2,16,256], index: 3, kind: input, shape index: {}]   ;;  %s3793_s4 = inlined_call_operand.hbm [shape: f32[2,16,256], index: 4, kind: input, shape index: {}]   ;;  %s3794_s5 = inlined_call_operand.hbm [shape: f32[2,1,128], index: 5, kind: output, shape index: {}]  }
   0x1   :  { %11 = vsyncpa [#allocation11], 0 }
   0x2   :  { %13 = vsyncpa [#allocation11 + $0x1], 0 }
   0x3   :  { %14 = vsyncpa [#allocation9], 0 }
   0x4   :  { %16 = vsyncpa [#allocation9 + $0x1], 0  ;;  %s2442_s18 = smov 0   ;;  %s2444_s19 = smov 0  }
   0x5   :  { %s2446_s20 = smov 0   ;;  %s2448_s21 = smov 0  }
   0x6   :  { %s2450_s3 = smov 0   ;;  %s2452_s22 = smov 0  }
   0x7 LB: > { %s34_s4 = sadd.s32 1, %s2399_s3  ;;  %s64_s23 = sadd.s32 1, %s2391_s20  ;;  %s2403_s22 = sphi %s2452_s22, %s22_s22   ;;  %s2399_s3 = sphi %s2450_s3, %s4009_s3   ;;  %s2395_s21 = sphi %s2448_s21, %s4008_s21   ;;  %s2391_s20 = sphi %s2446_s20, %s4007_s20   ;;  %s2387_s19 = sphi %s2444_s19, %s4006_s19   ;;  %s2383_s18 = sphi %s2442_s18, %s4005_s18  }
   0x8   : > { %p36_p0 = scmp.ge.s32.totalorder %s34_s4, 2  ;;  %p71_p1 = scmp.ne.s32.totalorder %s2391_s20, %s2387_s19 }
   0x9   : > { %p72_p2 = scmp.eq.s32.totalorder %s2403_s22, 0  ;;  %p2166_p6 = scmp.lt.s32.totalorder %s2403_s22, 2 }
   0xa   : > { %s4011_s4 = smov (%p36_p0, %s34_s4), 0  ;;  %s168_s26 = sand.u32 1, %s2403_s22  }
   0xb   : > { %p2482_p3 = por %p72_p2, %p71_p1  ;;  %s59_s25 = ssub.s32 %s2399_s3, %s4011_s4 }
   0xc   : > { %p62_p5 = scmp.eq.s32.totalorder %s59_s25, 0  ;;  %s170_s27 = sand.u32 1, %s2391_s20  }
   0xd   : > { %s2495_s29 = sshll.u32 %s170_s27, 5  ;;  %s1784_s30 = sshll.u32 %s2399_s3, 9 }
   0xe   : > { %s2493_s28 = scalar_select %p62_p5, %s2391_s20, %s64_s23  }
   0xf   : > { %s2501_s8 = scalar_lea.hbm %s3790_s1, %s1784_s30  ;;  %s172_s9 = scalar_lea.vmem [#allocation10], %s2495_s29 }
  0x10   : > { %s182_s10 = sshll.u32 %s172_s9, 4  ;;  %p2508_p7 = pnand %p2166_p6, %p2482_p3  ;;  %s2504_s10 = int_to_ptr.vmem [resolvable:$true] %s182_s10 }
  0x11   : > { %s2515_s14 = scalar_lea.hbm %s3791_s2, %s1784_s30  ;;  %s2517_s15 = scalar_lea.sflag [#allocation11], %s168_s26 }
  0x12   : > { %s2229_s16 = scalar_lea.hbm %s2501_s8, 512  ;;  %p2231_p9 = pneg %p2508_p7 }
  0x13   : > { %p2230_p8 = scmp.ne.s32.totalorder %s2501_s8, %s2229_s16  ;;  %s2234_s24 = scalar_lea.hbm %s3790_s1, 1024 }
  0x14   : > { %p2235_p12 = scmp.lt.u32.totalorder %s2501_s8, %s3790_s1  ;;  %p2236_p13 = scmp.lt.u32.totalorder %s2234_s24, %s2229_s16 }
  0x15   : > { %p2232_p10 = pnand %p2231_p9, %p2230_p8  ;;  %p2238_p2 = scmp.lt.u32.totalorder %s2229_s16, %s2501_s8 }
  0x16   : > { %p2237_p0 = por %p2236_p13, %p2235_p12 }
  0x17   : > { %p2233_p11 = pneg %p2232_p10 }
  0x18   : > { %p2239_p3 = por %p2238_p2, %p2237_p0 }
  0x1a   : > { %p2240_p5 = pnand %p2239_p3, %p2233_p11 }
  0x1c   : > { %2243 = shalt.err (!%p2240_p5)
}
  0x1d   : > { %s2244_s26 = scalar_lea.vmem %s2504_s10, 512  ;;  %s2405_s30 = smov [#allocation10]  }
  0x1e   : > { %p2245_p6 = scmp.ne.s32.totalorder %s2504_s10, %s2244_s26  ;;  %s2249_s6 = sshll.u32 %s2405_s30, 4  ;;  %s2250_s6 = int_to_ptr.vmem [resolvable:$false] %s2249_s6 }
  0x1f   : > { %s2251_s7 = scalar_lea.vmem %s2250_s6, 1024  ;;  %p2252_p4 = scmp.lt.s32.totalorder %s2504_s10, %s2250_s6 }
  0x20   : > { %p2247_p8 = pnand %p2245_p6, %p2231_p9  ;;  %p2253_p12 = scmp.lt.s32.totalorder %s2251_s7, %s2244_s26 }
  0x22   : > { %p2248_p10 = pneg %p2247_p8  ;;  %p2254_p13 = por %p2253_p12, %p2252_p4 }
  0x24   : > { %p2255_p0 = pnand %p2254_p13, %p2248_p10 }
  0x26   : > { %2258 = shalt.err (!%p2255_p0)
}
  0x27   : > { %s2406_s9 = smov 256   ;;  %s2407_s12 = smov 16  }
  0x28   : > { %2157 = dma.hbm_to_vmem [thread:$0]  (!%p2508_p7), %s2501_s8, 512, %s2504_s10, %s2517_s15, %s2406_s9, %s2406_s9, %s2407_s12  }
  0x29   : > { %s196_s13 = scalar_lea.vmem [#allocation12], %s2495_s29  ;;  %s2550_s17 = sadd.s32 4294967295, %s2403_s22  }
  0x2a   : > { %s206_s16 = sshll.u32 %s196_s13, 4  ;;  %s1763_s23 = sadd.s32 4294967294, %s2403_s22   ;;  %s2576_s16 = int_to_ptr.vmem [resolvable:$true] %s206_s16 }
  0x2b   : > { %p77_p4 = scmp.ne.s32.totalorder %s2387_s19, %s2383_s18  ;;  %p3795_p11 = scmp.eq.s32.totalorder %s2550_s17, 0 }
  0x2c   : > { %p129_p2 = scmp.eq.s32.totalorder %s2550_s17, 1  ;;  %p135_p3 = scmp.eq.s32.totalorder %s1763_s23, 1 }
  0x2d   : > { %p1764_p5 = scmp.ge.s32.totalorder %s2403_s22, 1  ;;  %p2560_p6 = por %p3795_p11, %p77_p4 }
  0x2e   : > { %p2567_p8 = por %p129_p2, %p71_p1  ;;  %p2571_p10 = por %p135_p3, %p77_p4 }
  0x2f   : > { %s3895_s8 = scalar_select %p2560_p6, 1, 0 }
  0x30   : > { %s3896_s29 = scalar_select %p2567_p8, 1, 0 }
  0x31   : > { %s3897_s10 = scalar_select %p2571_p10, 1, 0 }
  0x32   : > { %p142_p12 = scmp.lt.s32.totalorder %s2403_s22, 3  ;;  %s2408_s25 = smov [#allocation7]  }
  0x33   : > { %s2582_s27 = sshll.u32 %s2408_s25, 4  ;;  %s2259_s26 = scalar_lea.hbm %s2515_s14, 512  ;;  %s155_s27 = int_to_ptr.vmem [resolvable:$true] %s2582_s27 }
  0x34   : > { %p2578_p13 = pnand %p1764_p5, %p142_p12  ;;  %p2260_p0 = scmp.ne.s32.totalorder %s2515_s14, %s2259_s26 }
  0x35   : > { %s2264_s7 = scalar_lea.hbm %s3791_s2, 1024  ;;  %p2265_p3 = scmp.lt.u32.totalorder %s2515_s14, %s3791_s2 }
  0x36   : > { %s3898_s24 = scalar_select %p2578_p13, 1, 0 }
  0x37   : > { %p2262_p4 = pnand %p2260_p0, %p2231_p9  ;;  %p2266_p5 = scmp.lt.u32.totalorder %s2264_s7, %s2259_s26 }
  0x38   : > { %p2268_p11 = scmp.lt.u32.totalorder %s2259_s26, %s2515_s14 }
  0x39   : > { %p2263_p2 = pneg %p2262_p4  ;;  %p2267_p12 = por %p2266_p5, %p2265_p3 }
  0x3b   : > { %p2269_p10 = por %p2268_p11, %p2267_p12 }
  0x3d   : > { %p2270_p8 = pnand %p2269_p10, %p2263_p2 }
  0x3f   : > { %2273 = shalt.err (!%p2270_p8)
}
  0x40   : > { %s2274_s25 = scalar_lea.vmem %s2576_s16, 512  ;;  %s2409_s30 = smov [#allocation12]  }
  0x41   : > { %p2275_p0 = scmp.ne.s32.totalorder %s2576_s16, %s2274_s25  ;;  %s2279_s6 = sshll.u32 %s2409_s30, 4  ;;  %s2280_s6 = int_to_ptr.vmem [resolvable:$false] %s2279_s6 }
  0x42   : > { %s2281_s13 = scalar_lea.vmem %s2280_s6, 1024  ;;  %p2282_p6 = scmp.lt.s32.totalorder %s2576_s16, %s2280_s6 }
  0x43   : > { %p2277_p4 = pnand %p2275_p0, %p2231_p9  ;;  %p2283_p3 = scmp.lt.s32.totalorder %s2281_s13, %s2274_s25 }
  0x45   : > { %p2278_p1 = pneg %p2277_p4  ;;  %p2284_p5 = por %p2283_p3, %p2282_p6 }
  0x47   : > { %p2285_p11 = pnand %p2284_p5, %p2278_p1 }
  0x49   : > { %2288 = shalt.err (!%p2285_p11)
}
  0x4a   : > { %2160 = dma.hbm_to_vmem [thread:$0]  (!%p2508_p7), %s2515_s14, 512, %s2576_s16, %s2517_s15, %s2406_s9, %s2406_s9, %s2407_s12  }
  0x4b   : > { %p3899_p9 = scmp.eq.s32.totalorder %s2550_s17, 0  ;;  %p3900_p8 = pneg %p2578_p13 }
  0x4c   : > { %s2289_s23 = scalar_lea.hbm %s3789_s0, 8192 }
  0x4d   : > { %p2619_p10 = pnand %p3900_p8, %p3899_p9  ;;  %p2290_p6 = scmp.ne.s32.totalorder %s3789_s0, %s2289_s23 }
  0x4e   : > { %p2296_p12 = scmp.lt.u32.totalorder %s2289_s23, %s3789_s0 }
  0x4f   : > { %p2291_p1 = pneg %p2619_p10 }
  0x51   : > { %p2292_p7 = pnand %p2291_p1, %p2290_p6 }
  0x53   : > { %p2293_p2 = pneg %p2292_p7 }
  0x55   : > { %p2298_p0 = pnand %p2296_p12, %p2293_p2 }
  0x57   : > { %2301 = shalt.err (!%p2298_p0)
}
  0x58   : > { %s2302_s16 = scalar_lea.vmem %s155_s27, 8192  ;;  %p2310_p11 = scmp.lt.s32.totalorder %s155_s27, %s155_s27 }
  0x59   : > { %p2303_p4 = scmp.ne.s32.totalorder %s155_s27, %s2302_s16  ;;  %p2311_p9 = scmp.lt.s32.totalorder %s2302_s16, %s2302_s16 }
  0x5b   : > { %p2305_p3 = pnand %p2303_p4, %p2291_p1  ;;  %p2312_p8 = por %p2311_p9, %p2310_p11 }
  0x5d   : > { %p2306_p5 = pneg %p2305_p3 }
  0x5f   : > { %p2313_p13 = pnand %p2312_p8, %p2306_p5 }
  0x61   : > { %2316 = shalt.err (!%p2313_p13)
}
  0x62   : > { %2153 = dma.hbm_to_vmem [thread:$0]  (!%p2619_p10), %s3789_s0, 8192, %s155_s27, [#allocation8], %s2406_s9, %s2406_s9, %s2407_s12  }
  0x63   : > { %p3902_p6 = scmp.ne.s32.totalorder %s3898_s24, 0 }
  0x65   : > { %218 = sbr.rel (%p3902_p6) target bundleno = 771 (0x303), region = 32 }
  0x6c   : > { %p3903_p1 = scmp.eq.s32.totalorder %s2550_s17, 0 }
  0x6e   : > { %2370 = dma.done.wait (%p3903_p1), [#allocation8], 8192   ;;  %p3904_p7 = pmov %p3903_p1 }
  0x6f   : > { %s224_s26 = sand.u32 1, %s2550_s17   ;;  %s2650_s7 = sand.u32 1, %s2387_s19  }
  0x70   : > { %2372 = vsyncadd (%p3904_p7), [#allocation8], 4294959104  ;;  %s1775_s11 = sshll.u32 %s2650_s7, 5  ;;  %s225_s23 = scalar_lea.sflag [#allocation11], %s224_s26 }
  0x71   : > { %s2655_s9 = scalar_lea.vmem [#allocation10], %s1775_s11  ;;  %p3905_p13 = scmp.ne.s32.totalorder %s3895_s8, 0 }
  0x73   : > { %2374 = dma.done.wait (%p3905_p13), %s225_s23, 1024  }
  0x74   : > { %2376 = vsyncadd (%p3905_p13), %s225_s23, 4294966272  ;;  %v1036_v0 = vld [vmem:[#allocation7 + $0x8] sm:$0xff]  ;;  %v1038_v1 = vld [vmem:[#allocation7 + $0x18] sm:$0xff]  ;;  %v3799_v57 = vmov 0.0   ;;  %vm283_vm0 = vcmask 1043456   ;;  %vm379_vm1 = vcmask 1046528  }
  0x75   : > { %v1035_v2 = vld [vmem:[#allocation7] sm:$0xff]  ;;  %v2661_v3 = vpack.c.bf16 %v1038_v1, %v1036_v0  ;;  %v1037_v4 = vld [vmem:[#allocation7 + $0x10] sm:$0xff]  ;;  %v1040_v5 = vld [vmem:[#allocation7 + $0x28] sm:$0xff]  ;;  %v2695_v58 = vcombine.high %v3799_v57, %v3799_v57  ;;  %v2699_v59 = vcombine.low %v3799_v57, %v3799_v57  ;;  %vm470_vm2 = vcmask 1045504   ;;  %s2760_s12 = scalar_lea.vmem [#allocation12], %s1775_s11  ;;  %s263_s17 = scalar_lea.vmem [#allocation13], %s2650_s7 }
  0x76   : > { %v1042_v6 = vld [vmem:[#allocation7 + $0x38] sm:$0xff]  ;;  %v2663_v7 = vpack.c.bf16 %v1037_v4, %v1035_v2  ;;  %v1039_v9 = vld [vmem:[#allocation7 + $0x20] sm:$0xff]  ;;  %v1041_v10 = vld [vmem:[#allocation7 + $0x30] sm:$0xff]  ;;  %vm561_vm3 = vcmask 1044480   ;;  %vm742_vm4 = vcmask 1042432   ;;  %vm833_vm5 = vcmask 1041408  }
  0x77   : > { %v2665_v8 = vpack.c.bf16 %v1042_v6, %v1040_v5  ;;  %v1044_v11 = vld [vmem:[#allocation7 + $0x48] sm:$0xff]  ;;  %1787 = vmatprep.subr.bf16.mxu0 %v2661_v3  ;;  %1851 = vmatprep.subr.bf16.mxu1 %v2661_v3  ;;  %v1046_v12 = vld [vmem:[#allocation7 + $0x58] sm:$0xff]  ;;  %v2671_v13 = vpack.c.bf16 %v1041_v10, %v1039_v9  ;;  %v1043_v15 = vld [vmem:[#allocation7 + $0x40] sm:$0xff]  ;;  %vm924_vm6 = vcmask 1040384   ;;  %s1777_s8 = sshll.u32 %s2395_s21, 4  ;;  %s1623_s24 = sshll.u32 %s263_s17, 4  ;;  %s3742_s24 = int_to_ptr.vmem [resolvable:$true] %s1623_s24 }
  0x78   : > { %1789 = vmatpush1.bf16.msra.mxu0 %v2663_v7  ;;  %1853 = vmatpush1.bf16.msra.mxu1 %v2663_v7  ;;  %v2675_v14 = vpack.c.bf16 %v1046_v12, %v1044_v11  ;;  %v1045_v16 = vld [vmem:[#allocation7 + $0x50] sm:$0xff]  ;;  %v1048_v17 = vld [vmem:[#allocation7 + $0x68] sm:$0xff]  ;;  %v1050_v18 = vld [vmem:[#allocation7 + $0x78] sm:$0xff]  ;;  %s3740_s14 = scalar_lea.hbm %s3794_s5, %s1777_s8  ;;  %s1611_s15 = scalar_lea.sflag [#allocation9], %s2650_s7 }
  0x79   : > { %1791 = vmatprep.subr.bf16.mxu0 %v2665_v8  ;;  %1855 = vmatprep.subr.bf16.mxu1 %v2665_v8  ;;  %v2679_v19 = vpack.c.bf16 %v1045_v16, %v1043_v15  ;;  %v2683_v20 = vpack.c.bf16 %v1050_v18, %v1048_v17  ;;  %v1047_v21 = vld [vmem:[#allocation7 + $0x60] sm:$0xff]  ;;  %v1049_v22 = vld [vmem:[#allocation7 + $0x70] sm:$0xff]  ;;  %v1052_v23 = vld [vmem:[#allocation7 + $0x88] sm:$0xff]  ;;  %s2317_s16 = scalar_lea.vmem %s3742_s24, 16  ;;  %p4002_p2 = scmp.ne.s32.totalorder %s3896_s29, 0 }
  0x7a   : > { %v1054_v24 = vld [vmem:[#allocation7 + $0x98] sm:$0xff]  ;;  %v1051_v25 = vld [vmem:[#allocation7 + $0x80] sm:$0xff]  ;;  %v1053_v26 = vld [vmem:[#allocation7 + $0x90] sm:$0xff]  ;;  %v2687_v31 = vpack.c.bf16 %v1049_v22, %v1047_v21  ;;  %p2318_p10 = scmp.ne.s32.totalorder %s3742_s24, %s2317_s16  ;;  %s2411_s21 = smov [#allocation13]  }
  0x7b   : > { %v1056_v27 = vld [vmem:[#allocation7 + $0xa8] sm:$0xff]  ;;  %v1058_v28 = vld [vmem:[#allocation7 + $0xb8] sm:$0xff]  ;;  %v1055_v29 = vld [vmem:[#allocation7 + $0xa0] sm:$0xff]  ;;  %v2691_v38 = vpack.c.bf16 %v1054_v24, %v1052_v23  ;;  %v2703_v60 = vpack.c.bf16 %v1053_v26, %v1051_v25  ;;  %s2321_s6 = sshll.u32 %s2411_s21, 4  ;;  %s2322_s6 = int_to_ptr.vmem [resolvable:$false] %s2321_s6 }
  0x7c   : > { %1793 = vmatpush1.bf16.msra.mxu0 %v2671_v13  ;;  %1857 = vmatpush1.bf16.msra.mxu1 %v2671_v13  ;;  %v1057_v30 = vld [vmem:[#allocation7 + $0xb0] sm:$0xff]  ;;  %v1060_v32 = vld [vmem:[#allocation7 + $0xc8] sm:$0xff]  ;;  %v1062_v33 = vld [vmem:[#allocation7 + $0xd8] sm:$0xff]  ;;  %v2705_v61 = vpack.c.bf16 %v1058_v28, %v1056_v27  ;;  %p2319_p12 = pnand %p2318_p10, %p4002_p2  ;;  %s2323_s13 = scalar_lea.vmem %s2322_s6, 32 }
  0x7d   : > { %1795 = vmatprep.subr.bf16.mxu0 %v2675_v14  ;;  %1859 = vmatprep.subr.bf16.mxu1 %v2675_v14  ;;  %v1059_v34 = vld [vmem:[#allocation7 + $0xc0] sm:$0xff]  ;;  %v1061_v35 = vld [vmem:[#allocation7 + $0xd0] sm:$0xff]  ;;  %v1064_v36 = vld [vmem:[#allocation7 + $0xe8] sm:$0xff]  ;;  %v2707_v62 = vpack.c.bf16 %v1057_v30, %v1055_v29  ;;  %v2711_v2 = vpack.c.bf16 %v1062_v33, %v1060_v32  ;;  %p2324_p4 = scmp.lt.s32.totalorder %s3742_s24, %s2322_s6  ;;  %p2325_p3 = scmp.lt.s32.totalorder %s2323_s13, %s2317_s16 }
  0x7e   : > { %v1066_v37 = vld [vmem:[#allocation7 + $0xf8] sm:$0xff]  ;;  %v1063_v39 = vld [vmem:[#allocation7 + $0xe0] sm:$0xff]  ;;  %v1065_v40 = vld [vmem:[#allocation7 + $0xf0] sm:$0xff]  ;;  %v2713_v4 = vpack.c.bf16 %v1061_v35, %v1059_v34  ;;  %p2320_p0 = pneg %p2319_p12 }
  0x7f   : > { %v1068_v41 = vld [vmem:[#allocation7 + $0x108] sm:$0xff]  ;;  %v1070_v42 = vld [vmem:[#allocation7 + $0x118] sm:$0xff]  ;;  %v1067_v43 = vld [vmem:[#allocation7 + $0x100] sm:$0xff]  ;;  %v2715_v5 = vpack.c.bf16 %v1066_v37, %v1064_v36  ;;  %v2717_v11 = vpack.c.bf16 %v1065_v40, %v1063_v39  ;;  %p2326_p5 = por %p2325_p3, %p2324_p4 }
  0x80   : > { %1797 = vmatpush1.bf16.msra.mxu0 %v2679_v19  ;;  %1861 = vmatpush1.bf16.msra.mxu1 %v2679_v19  ;;  %v1069_v44 = vld [vmem:[#allocation7 + $0x110] sm:$0xff]  ;;  %v1072_v45 = vld [vmem:[#allocation7 + $0x128] sm:$0xff]  ;;  %v1074_v46 = vld [vmem:[#allocation7 + $0x138] sm:$0xff]  ;;  %v2719_v12 = vpack.c.bf16 %v1070_v42, %v1068_v41 }
  0x81   : > { %1799 = vmatprep.subr.bf16.mxu0 %v2683_v20  ;;  %1863 = vmatprep.subr.bf16.mxu1 %v2683_v20  ;;  %v1071_v47 = vld [vmem:[#allocation7 + $0x120] sm:$0xff]  ;;  %v1073_v48 = vld [vmem:[#allocation7 + $0x130] sm:$0xff]  ;;  %v1076_v49 = vld [vmem:[#allocation7 + $0x148] sm:$0xff]  ;;  %v2721_v15 = vpack.c.bf16 %v1069_v44, %v1067_v43  ;;  %v2723_v16 = vpack.c.bf16 %v1074_v46, %v1072_v45  ;;  %p2327_p11 = pnand %p2326_p5, %p2320_p0 }
  0x82   : > { %v1078_v50 = vld [vmem:[#allocation7 + $0x158] sm:$0xff]  ;;  %v1075_v51 = vld [vmem:[#allocation7 + $0x140] sm:$0xff]  ;;  %v1077_v52 = vld [vmem:[#allocation7 + $0x150] sm:$0xff]  ;;  %v2725_v22 = vpack.c.bf16 %v1073_v48, %v1071_v47 }
  0x83   : > { %v1080_v53 = vld [vmem:[#allocation7 + $0x168] sm:$0xff]  ;;  %v1082_v54 = vld [vmem:[#allocation7 + $0x178] sm:$0xff]  ;;  %v1079_v55 = vld [vmem:[#allocation7 + $0x160] sm:$0xff]  ;;  %3906 = vst [vmem:[#allocation17_spill] sm:$0xff] %v2721_v15  ;;  %v2727_v23 = vpack.c.bf16 %v1078_v50, %v1076_v49  ;;  %v2729_v24 = vpack.c.bf16 %v1077_v52, %v1075_v51 }
  0x84   : > { %v1081_v56 = vld [vmem:[#allocation7 + $0x170] sm:$0xff]  ;;  %1801 = vmatpush1.bf16.msra.mxu0 %v2687_v31  ;;  %1865 = vmatpush1.bf16.msra.mxu1 %v2687_v31  ;;  %v1084_v63 = vld [vmem:[#allocation7 + $0x188] sm:$0xff]  ;;  %v1086_v0 = vld [vmem:[#allocation7 + $0x198] sm:$0xff]  ;;  %3907 = vst [vmem:[#allocation18_spill] sm:$0xff] %v2723_v16  ;;  %v2731_v25 = vpack.c.bf16 %v1082_v54, %v1080_v53 }
  0x85   : > { %v1083_v1 = vld [vmem:[#allocation7 + $0x180] sm:$0xff]  ;;  %1803 = vmatprep.subr.bf16.mxu0 %v2691_v38  ;;  %1867 = vmatprep.subr.bf16.mxu1 %v2691_v38  ;;  %v1085_v6 = vld [vmem:[#allocation7 + $0x190] sm:$0xff]  ;;  %v1088_v9 = vld [vmem:[#allocation7 + $0x1a8] sm:$0xff]  ;;  %3908 = vst [vmem:[#allocation19_spill] sm:$0xff] %v2725_v22  ;;  %v2735_v29 = vpack.c.bf16 %v1081_v56, %v1079_v55  ;;  %v2737_v30 = vpack.c.bf16 %v1086_v0, %v1084_v63 }
  0x86   : > { %v1090_v10 = vld [vmem:[#allocation7 + $0x1b8] sm:$0xff]  ;;  %v1087_v17 = vld [vmem:[#allocation7 + $0x1a0] sm:$0xff]  ;;  %v1089_v18 = vld [vmem:[#allocation7 + $0x1b0] sm:$0xff]  ;;  %3909 = vst [vmem:[#allocation20_spill] sm:$0xff] %v2727_v23  ;;  %v2739_v32 = vpack.c.bf16 %v1085_v6, %v1083_v1 }
  0x87   : > { %v1092_v21 = vld [vmem:[#allocation7 + $0x1c8] sm:$0xff]  ;;  %3910 = vst [vmem:[#allocation21_spill] sm:$0xff] %v2729_v24  ;;  %3911 = vst [vmem:[#allocation22_spill] sm:$0xff] %v2731_v25  ;;  %v1094_v26 = vld [vmem:[#allocation7 + $0x1d8] sm:$0xff]  ;;  %v2743_v36 = vpack.c.bf16 %v1090_v10, %v1088_v9  ;;  %v2745_v37 = vpack.c.bf16 %v1089_v18, %v1087_v17 }
  0x88   : > { %v1091_v27 = vld [vmem:[#allocation7 + $0x1c0] sm:$0xff]  ;;  %v1093_v28 = vld [vmem:[#allocation7 + $0x1d0] sm:$0xff]  ;;  %1805 = vmatpush1.bf16.msra.mxu0 %v2703_v60  ;;  %1869 = vmatpush1.bf16.msra.mxu1 %v2703_v60  ;;  %3912 = vst [vmem:[#allocation23_spill] sm:$0xff] %v2735_v29  ;;  %3913 = vst [vmem:[#allocation24_spill] sm:$0xff] %v2737_v30  ;;  %v2747_v39 = vpack.c.bf16 %v1094_v26, %v1092_v21 }
  0x89   : > { %3914 = vst [vmem:[#allocation25_spill] sm:$0xff] %v2739_v32  ;;  %v1096_v33 = vld [vmem:[#allocation7 + $0x1e8] sm:$0xff]  ;;  %v1098_v34 = vld [vmem:[#allocation7 + $0x1f8] sm:$0xff]  ;;  %v1095_v35 = vld [vmem:[#allocation7 + $0x1e0] sm:$0xff]  ;;  %1807 = vmatprep.subr.bf16.mxu0 %v2705_v61  ;;  %1871 = vmatprep.subr.bf16.mxu1 %v2705_v61  ;;  %v2753_v43 = vpack.c.bf16 %v1093_v28, %v1091_v27 }
  0x8a   : > { %3915 = vst [vmem:[#allocation26_spill] sm:$0xff] %v2743_v36  ;;  %3916 = vst [vmem:[#allocation27_spill] sm:$0xff] %v2745_v37  ;;  %v1097_v40 = vld [vmem:[#allocation7 + $0x1f0] sm:$0xff]  ;;  %v272_v41 = vld [vmem:[%s2655_s9 + $0x8] sm:$0xff]  ;;  %v2755_v44 = vpack.c.bf16 %v1098_v34, %v1096_v33 }
  0x8b   : > { %3917 = vst [vmem:[#allocation28_spill] sm:$0xff] %v2747_v39  ;;  %v2751_v42 = vld [vmem:[%s2655_s9 + $0x18] sm:$0xff]  ;;  %3918 = vst [vmem:[#allocation29_spill] sm:$0xff] %v2753_v43  ;;  %v285_v45 = vrot.slane %v272_v41, 4  ;;  %v305_v47 = vld [vmem:[%s2760_s12 + $0x8] sm:$0xff]  ;;  %v2769_v50 = vpack.c.bf16 %v1097_v40, %v1095_v35 }
  0x8c   : > { %3919 = vst [vmem:[#allocation30_spill] sm:$0xff] %v2755_v44  ;;  %v3809_v46 = vrot.slane %v2751_v42, 4  ;;  %v2764_v48 = vld [vmem:[%s2760_s12 + $0x18] sm:$0xff]  ;;  %v2767_v49 = vld [vmem:[%s2655_s9] sm:$0xff]  ;;  %v317_v51 = vrot.slane %v305_v47, 4  ;;  %v2773_v53 = vld [vmem:[%s2655_s9 + $0x10] sm:$0xff]  ;;  %1809 = vmatpush1.bf16.msra.mxu0 %v2707_v62  ;;  %1873 = vmatpush1.bf16.msra.mxu1 %v2707_v62 }
  0x8d   : > { %v3801_v52 = vrot.slane %v2764_v48, 4  ;;  %v284_v54 = vrot.slane %v2767_v49, 4  ;;  %v2777_v55 = vld [vmem:[%s2760_s12] sm:$0xff]  ;;  %v2788_v63 = vsel %vm283_vm0, %v2695_v58, %v285_v45  ;;  %v3808_v0 = vrot.slane %v2773_v53, 4  ;;  %1811 = vmatprep.subr.bf16.mxu0 %v2711_v2  ;;  %1875 = vmatprep.subr.bf16.mxu1 %v2711_v2 }
  0x8e   : > { %v2784_v56 = vsel %vm283_vm0, %v285_v45, %v3809_v46  ;;  %v316_v1 = vrot.slane %v2777_v55, 4  ;;  %v383_v6 = vrot.slane %v2788_v63, 1  ;;  %v474_v10 = vrot.slane %v2788_v63, 2 }
  0x8f   : > { %v3807_v9 = vrot.slane %v2784_v56, 1  ;;  %v3804_v17 = vrot.slane %v2784_v56, 2  ;;  %v565_v18 = vrot.slane %v2788_v63, 3  ;;  %v3803_v21 = vrot.slane %v2784_v56, 3 }
  0x90   : > { %v655_v26 = vrot.slane %v2788_v63, 4  ;;  %v3800_v27 = vrot.slane %v2784_v56, 4  ;;  %v746_v34 = vrot.slane %v2788_v63, 5  ;;  %v3802_v35 = vrot.slane %v2784_v56, 5  ;;  %1813 = vmatpush1.bf16.msra.mxu0 %v2713_v4  ;;  %1877 = vmatpush1.bf16.msra.mxu1 %v2713_v4 }
  0x91   : > { %v385_v28 = vsel %vm379_vm1, %v383_v6, %v3807_v9  ;;  %v476_v33 = vsel %vm470_vm2, %v474_v10, %v3804_v17  ;;  %v567_v41 = vsel %vm561_vm3, %v565_v18, %v3803_v21  ;;  %v837_v47 = vrot.slane %v2788_v63, 6  ;;  %1815 = vmatprep.subr.bf16.mxu0 %v2715_v5  ;;  %1879 = vmatprep.subr.bf16.mxu1 %v2715_v5 }
  0x92   : > { %v451_v40 = vadd.f32 %v385_v28, %v2788_v63  ;;  %v657_v45 = vsel %vm283_vm0, %v655_v26, %v3800_v27  ;;  %v748_v6 = vsel %vm742_vm4, %v746_v34, %v3802_v35  ;;  %v3806_v10 = vrot.slane %v2784_v56, 6 }
  0x93   : > { %v928_v28 = vrot.slane %v2788_v63, 7  ;;  %v3805_v18 = vrot.slane %v2784_v56, 7  ;;  %v2831_v26 = vsel %vm283_vm0, %v317_v51, %v3801_v52  ;;  %v2835_v27 = vsel %vm283_vm0, %v2695_v58, %v317_v51 }
  0x94   : > { %v542_v57 = vadd.f32 %v476_v33, %v451_v40  ;;  %v2842_v34 = vsel %vm283_vm0, %v284_v54, %v3808_v0  ;;  %v839_v33 = vsel %vm833_vm5, %v837_v47, %v3806_v10  ;;  %v393_v52 = vrot.slane %v2835_v27, 1  ;;  %1817 = vmatpush1.bf16.msra.mxu0 %v2717_v11  ;;  %1881 = vmatpush1.bf16.msra.mxu1 %v2717_v11 }
  0x95   : > { %v930_v40 = vsel %vm924_vm6, %v928_v28, %v3805_v18  ;;  %v3810_v58 = vrot.slane %v2831_v26, 1  ;;  %v484_v35 = vrot.slane %v2835_v27, 2  ;;  %v3811_v21 = vrot.slane %v2831_v26, 2  ;;  %1819 = vmatprep.subr.bf16.mxu0 %v2719_v12  ;;  %1883 = vmatprep.subr.bf16.mxu1 %v2719_v12 }
  0x96   : > { %v633_v51 = vadd.f32 %v567_v41, %v542_v57  ;;  %v575_v17 = vrot.slane %v2835_v27, 3  ;;  %v3813_v28 = vrot.slane %v2831_v26, 3  ;;  %v665_v18 = vrot.slane %v2835_v27, 4 }
  0x97   : > { %v395_v47 = vsel %vm379_vm1, %v393_v52, %v3810_v58  ;;  %v3812_v57 = vrot.slane %v2831_v26, 4  ;;  %v486_v9 = vsel %vm470_vm2, %v484_v35, %v3811_v21  ;;  %v756_v0 = vrot.slane %v2835_v27, 5 }
  0x98   : > { %v723_v41 = vadd.f32 %v657_v45, %v633_v51  ;;  %v455_v10 = vadd.f32 %v395_v47, %v2835_v27  ;;  %v577_v46 = vsel %vm561_vm3, %v575_v17, %v3813_v28  ;;  %v3814_v58 = vrot.slane %v2831_v26, 5  ;;  %1821 = vmatpush1.bf16.msra.mxu0 %v2721_v15  ;;  %1885 = vmatpush1.bf16.msra.mxu1 %v2721_v15 }
  0x99   : > { %v667_v52 = vsel %vm283_vm0, %v665_v18, %v3812_v57  ;;  %v847_v45 = vrot.slane %v2835_v27, 6  ;;  %v3816_v47 = vrot.slane %v2831_v26, 6  ;;  %v938_v21 = vrot.slane %v2835_v27, 7  ;;  %1823 = vmatprep.subr.bf16.mxu0 %v2723_v16  ;;  %1887 = vmatprep.subr.bf16.mxu1 %v2723_v16 }
  0x9a   : > { %v814_v51 = vadd.f32 %v748_v6, %v723_v41  ;;  %v546_v35 = vadd.f32 %v486_v9, %v455_v10  ;;  %v758_v17 = vsel %vm742_vm4, %v756_v0, %v3814_v58  ;;  %v3815_v18 = vrot.slane %v2831_v26, 7 }
  0x9b   : > { %v2891_v57 = vsel %vm283_vm0, 0.0, %v284_v54  ;;  %v3818_v9 = vrot.slane %v2842_v34, 1  ;;  %v849_v41 = vsel %vm833_vm5, %v847_v45, %v3816_v47  ;;  %v3817_v49 = vrot.slane %v2842_v34, 2  ;;  %v2924_v47 = vld [vmem:[%s2760_s12 + $0x10] sm:$0xff] }
  0x9c   : > { %v905_v6 = vadd.f32 %v839_v33, %v814_v51  ;;  %v637_v10 = vadd.f32 %v577_v46, %v546_v35  ;;  %v380_v28 = vrot.slane %v2891_v57, 1  ;;  %v940_v0 = vsel %vm924_vm6, %v938_v21, %v3815_v18  ;;  %1825 = vmatpush1.bf16.msra.mxu0 %v2725_v22  ;;  %1889 = vmatpush1.bf16.msra.mxu1 %v2725_v22 }
  0x9d   : > { %v471_v58 = vrot.slane %v2891_v57, 2  ;;  %v562_v54 = vrot.slane %v2891_v57, 3  ;;  %v3824_v51 = vrot.slane %v2842_v34, 3  ;;  %1827 = vmatprep.subr.bf16.mxu0 %v2727_v23  ;;  %1891 = vmatprep.subr.bf16.mxu1 %v2727_v23  ;;  %v652_v18 = vrot.slane %v2891_v57, 4 }
  0x9e   : > { %v996_v46 = vadd.f32 %v930_v40, %v905_v6  ;;  %v727_v33 = vadd.f32 %v667_v52, %v637_v10  ;;  %v382_v45 = vsel %vm379_vm1, %v380_v28, %v3818_v9  ;;  %v3819_v40 = vrot.slane %v2842_v34, 4 }
  0x9f   : > { %v450_v21 = vadd.f32 %v382_v45, %v2891_v57  ;;  %v473_v35 = vsel %vm470_vm2, %v471_v58, %v3817_v49  ;;  %v564_v28 = vsel %vm561_vm3, %v562_v54, %v3824_v51  ;;  %v743_v10 = vrot.slane %v2891_v57, 5 }
  0xa0   : > { %v1016_v52 = vadd.f32 %v996_v46, %v2784_v56  ;;  %v818_v6 = vadd.f32 %v758_v17, %v727_v33  ;;  %v654_v58 = vsel %vm283_vm0, %v652_v18, %v3819_v40  ;;  %v3820_v49 = vrot.slane %v2842_v34, 5  ;;  %1829 = vmatpush1.bf16.msra.mxu0 %v2729_v24  ;;  %1893 = vmatpush1.bf16.msra.mxu1 %v2729_v24 }
  0xa1   : > { %v541_v45 = vadd.f32 %v473_v35, %v450_v21  ;;  %v834_v9 = vrot.slane %v2891_v57, 6  ;;  %v3823_v54 = vrot.slane %v2842_v34, 6  ;;  %v925_v46 = vrot.slane %v2891_v57, 7  ;;  %1831 = vmatprep.subr.bf16.mxu0 %v2731_v25  ;;  %1895 = vmatprep.subr.bf16.mxu1 %v2731_v25 }
  0xa2   : > { %v909_v17 = vadd.f32 %v849_v41, %v818_v6  ;;  %v3821_v33 = vrot.slane %v2842_v34, 7  ;;  %v745_v21 = vsel %vm742_vm4, %v743_v10, %v3820_v49  ;;  %v3822_v35 = vrot.slane %v2924_v47, 4  ;;  %1163 = vmatprep.mubr.f32.mxu0 %v1016_v52 }
  0xa3   : > { %v632_v18 = vadd.f32 %v564_v28, %v541_v45  ;;  %v2945_v41 = vsel %vm283_vm0, 0.0, %v316_v1  ;;  %v836_v40 = vsel %vm833_vm5, %v834_v9, %v3823_v54 }
  0xa4   : > { %v1000_v6 = vadd.f32 %v940_v0, %v909_v17  ;;  %v927_v28 = vsel %vm924_vm6, %v925_v46, %v3821_v33  ;;  %v390_v45 = vrot.slane %v2945_v41, 1  ;;  %v2959_v49 = vsel %vm283_vm0, %v316_v1, %v3822_v35  ;;  %1833 = vmatpush1.bf16.msra.mxu0 %v2735_v29  ;;  %1897 = vmatpush1.bf16.msra.mxu1 %v2735_v29 }
  0xa5   : > { %v722_v10 = vadd.f32 %v654_v58, %v632_v18  ;;  %v481_v0 = vrot.slane %v2945_v41, 2  ;;  %v572_v52 = vrot.slane %v2945_v41, 3  ;;  %v3833_v17 = vrot.slane %v2959_v49, 1  ;;  %1835 = vmatprep.subr.bf16.mxu0 %v2737_v30  ;;  %1899 = vmatprep.subr.bf16.mxu1 %v2737_v30 }
  0xa6   : > { %v1020_v9 = vadd.f32 %v1000_v6, %v2831_v26  ;;  %v3832_v58 = vrot.slane %v2959_v49, 2  ;;  %v3829_v46 = vrot.slane %v2959_v49, 3  ;;  %v662_v1 = vrot.slane %v2945_v41, 4 }
  0xa7   : > { %v813_v55 = vadd.f32 %v745_v21, %v722_v10  ;;  %v3827_v18 = vrot.slane %v2959_v49, 4  ;;  %v753_v33 = vrot.slane %v2945_v41, 5  ;;  %v392_v6 = vsel %vm379_vm1, %v390_v45, %v3833_v17 }
  0xa8   : > { %1240 = vmatprep.mubr.f32.mxu1 %v1020_v9  ;;  %v483_v35 = vsel %vm470_vm2, %v481_v0, %v3832_v58  ;;  %v574_v54 = vsel %vm561_vm3, %v572_v52, %v3829_v46  ;;  %v3828_v21 = vrot.slane %v2959_v49, 5  ;;  %v454_v51 = vadd.f32 %v392_v6, %v2945_v41  ;;  %1837 = vmatpush1.bf16.msra.mxu0 %v2739_v32 }
  0xa9   : > { %v904_v10 = vadd.f32 %v836_v40, %v813_v55  ;;  %v664_v9 = vsel %vm283_vm0, %v662_v1, %v3827_v18  ;;  %v844_v30 = vrot.slane %v2945_v41, 6  ;;  %1901 = vmatpush1.bf16.msra.mxu1 %v2739_v32  ;;  %v3831_v0 = vrot.slane %v2959_v49, 6  ;;  %1839 = vmatprep.subr.bf16.mxu0 %v2743_v36 }
  0xaa   : > { %v755_v45 = vsel %vm742_vm4, %v753_v33, %v3828_v21  ;;  %v935_v40 = vrot.slane %v2945_v41, 7  ;;  %v3830_v52 = vrot.slane %v2959_v49, 7  ;;  %1903 = vmatprep.subr.bf16.mxu1 %v2743_v36  ;;  %v545_v1 = vadd.f32 %v483_v35, %v454_v51 }
  0xab   : > { %v995_v55 = vadd.f32 %v927_v28, %v904_v10  ;;  %v3920_v6 = vrot.slane %v2751_v42, 4  ;;  %v3921_v33 = vrot.slane %v2773_v53, 4  ;;  %v846_v46 = vsel %vm833_vm5, %v844_v30, %v3831_v0 }
  0xac   : > { %v937_v28 = vsel %vm924_vm6, %v935_v40, %v3830_v52  ;;  %v636_v10 = vadd.f32 %v574_v54, %v545_v1  ;;  %1841 = vmatpush1.bf16.msra.mxu0 %v2745_v37  ;;  %v3922_v30 = vrot.slane %v2784_v56, 1  ;;  %v3923_v40 = vrot.slane %v2784_v56, 2 }
  0xad   : > { %v3002_v18 = vsel %vm283_vm0, %v3920_v6, 0.0  ;;  %v3008_v21 = vsel %vm283_vm0, %v3921_v33, %v2699_v59  ;;  %v1015_v35 = vadd.f32 %v995_v55, %v2842_v34  ;;  %1905 = vmatpush1.bf16.msra.mxu1 %v2745_v37  ;;  %1843 = vmatprep.subr.bf16.mxu0 %v2747_v39  ;;  %v3924_v58 = vrot.slane %v2784_v56, 3 }
  0xae   : > { %v388_v51 = vrot.slane %v3002_v18, 1  ;;  %v479_v42 = vrot.slane %v3002_v18, 2  ;;  %v570_v53 = vrot.slane %v3002_v18, 3  ;;  %v660_v6 = vrot.slane %v3002_v18, 4  ;;  %1907 = vmatprep.subr.bf16.mxu1 %v2747_v39 }
  0xaf   : > { %v751_v0 = vrot.slane %v3002_v18, 5  ;;  %v842_v54 = vrot.slane %v3002_v18, 6  ;;  %v726_v55 = vadd.f32 %v664_v9, %v636_v10  ;;  %v3927_v36 = vrot.slane %v2784_v56, 6 }
  0xb0   : > { %v389_v33 = vsel %vm379_vm1, %v3922_v30, %v388_v51  ;;  %v480_v52 = vsel %vm470_vm2, %v3923_v40, %v479_v42  ;;  %v571_v17 = vsel %vm561_vm3, %v3924_v58, %v570_v53  ;;  %v933_v51 = vrot.slane %v3002_v18, 7  ;;  %1845 = vmatpush1.bf16.msra.mxu0 %v2753_v43 }
  0xb1   : > { %v453_v1 = vadd.f32 %v389_v33, %v2784_v56  ;;  %v3925_v30 = vrot.slane %v2784_v56, 4  ;;  %v3926_v40 = vrot.slane %v2784_v56, 5  ;;  %v843_v9 = vsel %vm833_vm5, %v3927_v36, %v842_v54  ;;  %1909 = vmatpush1.bf16.msra.mxu1 %v2753_v43  ;;  %1847 = vmatprep.subr.bf16.mxu0 %v2755_v44 }
  0xb2   : > { %v386_v10 = vrot.slane %v3008_v21, 1  ;;  %v817_v33 = vadd.f32 %v755_v45, %v726_v55  ;;  %v3928_v58 = vrot.slane %v2784_v56, 7  ;;  %v477_v32 = vrot.slane %v3008_v21, 2  ;;  %1911 = vmatprep.subr.bf16.mxu1 %v2755_v44 }
  0xb3   : > { %v661_v42 = vsel %vm283_vm0, %v3925_v30, %v660_v6  ;;  %v752_v37 = vsel %vm742_vm4, %v3926_v40, %v751_v0  ;;  %v544_v39 = vadd.f32 %v480_v52, %v453_v1  ;;  %v3929_v0 = vrot.slane %v2842_v34, 1 }
  0xb4   : > { %v934_v53 = vsel %vm924_vm6, %v3928_v58, %v933_v51  ;;  %v568_v36 = vrot.slane %v3008_v21, 3  ;;  %v658_v54 = vrot.slane %v3008_v21, 4  ;;  %v749_v45 = vrot.slane %v3008_v21, 5  ;;  %1849 = vmatpush1.bf16.msra.mxu0 %v2769_v50 }
  0xb5   : > { %v387_v6 = vsel %vm379_vm1, %v3929_v0, %v386_v10  ;;  %v908_v52 = vadd.f32 %v846_v46, %v817_v33  ;;  %v635_v55 = vadd.f32 %v571_v17, %v544_v39  ;;  %v840_v51 = vrot.slane %v3008_v21, 6  ;;  %1913 = vmatpush1.bf16.msra.mxu1 %v2769_v50  ;;  %1915 = vmatprep.subr.bf16.mxu0 %v2661_v3 }
  0xb6   : > { %v452_v1 = vadd.f32 %v387_v6, %v2842_v34  ;;  %v3930_v30 = vrot.slane %v2842_v34, 2  ;;  %v3931_v10 = vrot.slane %v2842_v34, 3  ;;  %v3932_v0 = vrot.slane %v2842_v34, 4  ;;  %1979 = vmatprep.subr.bf16.mxu1 %v2661_v3 }
  0xb7   : > { %v3933_v44 = vrot.slane %v2842_v34, 5  ;;  %v999_v17 = vadd.f32 %v937_v28, %v908_v52  ;;  %v725_v46 = vadd.f32 %v661_v42, %v635_v55  ;;  %v3934_v6 = vrot.slane %v2842_v34, 6  ;;  %1164 = vmatmul.mubr.f32.vlgmr.msra.gmra.mrb[0].mxu0 %v1015_v35 }
  0xb8   : > { %v478_v40 = vsel %vm470_vm2, %v3930_v30, %v477_v32  ;;  %v569_v58 = vsel %vm561_vm3, %v3931_v10, %v568_v36  ;;  %v659_v43 = vsel %vm283_vm0, %v3932_v0, %v658_v54  ;;  %v931_v32 = vrot.slane %v3008_v21, 7  ;;  %1917 = vmatpush1.bf16.msra.mxu0 %v2663_v7 }
  0xb9   : > { %v750_v39 = vsel %vm742_vm4, %v3933_v44, %v749_v45  ;;  %v543_v33 = vadd.f32 %v478_v40, %v452_v1  ;;  %v841_v29 = vsel %vm833_vm5, %v3934_v6, %v840_v51  ;;  %v3935_v36 = vrot.slane %v2764_v48, 4  ;;  %1919 = vmatprep.subr.bf16.mxu0 %v2665_v8 }
  0xba   : > { %v3936_v44 = vrot.slane %v2924_v47, 4  ;;  %v3095_v42 = vmul.f32 %v2788_v63, %v2788_v63  ;;  %v1019_v45 = vadd.f32 %v999_v17, %v2959_v49  ;;  %v816_v48 = vadd.f32 %v752_v37, %v725_v46 }
  0xbb   : > { %v3085_v54 = vsel %vm283_vm0, %v3935_v36, 0.0  ;;  %v634_v52 = vadd.f32 %v569_v58, %v543_v33  ;;  %v3937_v1 = vrot.slane %v2842_v34, 7  ;;  %v3938_v0 = vrot.slane %v2831_v26, 1 }
  0xbc   : > { %v3091_v28 = vsel %vm283_vm0, %v3936_v44, %v2699_v59  ;;  %v398_v55 = vrot.slane %v3085_v54, 1  ;;  %v489_v59 = vrot.slane %v3085_v54, 2  ;;  %v580_v51 = vrot.slane %v3085_v54, 3  ;;  %1241 = vmatmul.mubr.f32.vlgmr.msra.gmra.mrb[0].mxu1 %v1019_v45  ;;  %1921 = vmatpush1.bf16.msra.mxu0 %v2671_v13 }
  0xbd   : > { %v932_v47 = vsel %vm924_vm6, %v3937_v1, %v931_v32  ;;  %v670_v30 = vrot.slane %v3085_v54, 4  ;;  %v907_v40 = vadd.f32 %v843_v9, %v816_v48  ;;  %v724_v10 = vadd.f32 %v659_v43, %v634_v52  ;;  %1981 = vmatpush1.bf16.msra.mxu1 %v2663_v7  ;;  %1923 = vmatprep.subr.bf16.mxu0 %v2675_v14 }
  0xbe   : > { %v399_v37 = vsel %vm379_vm1, %v3938_v0, %v398_v55  ;;  %v761_v58 = vrot.slane %v3085_v54, 5  ;;  %v3939_v46 = vrot.slane %v2831_v26, 2  ;;  %v3940_v35 = vrot.slane %v2831_v26, 3  ;;  %1983 = vmatprep.subr.bf16.mxu1 %v2665_v8 }
  0xbf   : > { %v457_v17 = vadd.f32 %v399_v37, %v2831_v26  ;;  %v852_v9 = vrot.slane %v3085_v54, 6  ;;  %v998_v6 = vadd.f32 %v934_v53, %v907_v40  ;;  %v815_v32 = vadd.f32 %v750_v39, %v724_v10 }
  0xc0   : > { %v490_v33 = vsel %vm470_vm2, %v3939_v46, %v489_v59  ;;  %v581_v43 = vsel %vm561_vm3, %v3940_v35, %v580_v51  ;;  %v3941_v36 = vrot.slane %v2831_v26, 4  ;;  %v3942_v48 = vrot.slane %v2831_v26, 5  ;;  %1925 = vmatpush1.bf16.msra.mxu0 %v2679_v19 }
  0xc1   : > { %v548_v45 = vadd.f32 %v490_v33, %v457_v17  ;;  %v943_v55 = vrot.slane %v3085_v54, 7  ;;  %v396_v1 = vrot.slane %v3091_v28, 1  ;;  %v1018_v59 = vadd.f32 %v998_v6, %v3002_v18  ;;  %1985 = vmatpush1.bf16.msra.mxu1 %v2671_v13  ;;  %1927 = vmatprep.subr.bf16.mxu0 %v2683_v20 }
  0xc2   : > { %v671_v44 = vsel %vm283_vm0, %v3941_v36, %v670_v30  ;;  %v762_v52 = vsel %vm742_vm4, %v3942_v48, %v761_v58  ;;  %v906_v51 = vadd.f32 %v841_v29, %v815_v32  ;;  %v3943_v0 = vrot.slane %v2831_v26, 6  ;;  %1987 = vmatprep.subr.bf16.mxu1 %v2675_v14 }
  0xc3   : > { %v487_v39 = vrot.slane %v3091_v28, 2  ;;  %v639_v30 = vadd.f32 %v581_v43, %v548_v45  ;;  %v3944_v40 = vrot.slane %v2959_v49, 1  ;;  %v578_v37 = vrot.slane %v3091_v28, 3  ;;  %1169 = vmatprep.mubr.f32.mxu0 %v1018_v59 }
  0xc4   : > { %v853_v53 = vsel %vm833_vm5, %v3943_v0, %v852_v9  ;;  %v668_v58 = vrot.slane %v3091_v28, 4  ;;  %v997_v29 = vadd.f32 %v932_v47, %v906_v51  ;;  %v3945_v46 = vrot.slane %v2959_v49, 2  ;;  %1929 = vmatpush1.bf16.msra.mxu0 %v2687_v31 }
  0xc5   : > { %v397_v10 = vsel %vm379_vm1, %v3944_v40, %v396_v1  ;;  %v759_v35 = vrot.slane %v3091_v28, 5  ;;  %v729_v43 = vadd.f32 %v671_v44, %v639_v30  ;;  %v3946_v9 = vrot.slane %v2831_v26, 7  ;;  %1989 = vmatpush1.bf16.msra.mxu1 %v2679_v19  ;;  %1931 = vmatprep.subr.bf16.mxu0 %v2691_v38 }
  0xc6   : > { %v456_v17 = vadd.f32 %v397_v10, %v2959_v49  ;;  %v488_v33 = vsel %vm470_vm2, %v3945_v46, %v487_v39  ;;  %v3947_v32 = vrot.slane %v2959_v49, 3  ;;  %v850_v47 = vrot.slane %v3091_v28, 6  ;;  %1991 = vmatprep.subr.bf16.mxu1 %v2683_v20 }
  0xc7   : > { %v944_v6 = vsel %vm924_vm6, %v3946_v9, %v943_v55  ;;  %v1017_v45 = vadd.f32 %v997_v29, %v3008_v21  ;;  %v3948_v1 = vrot.slane %v2959_v49, 4  ;;  %v3949_v59 = vrot.slane %v2959_v49, 5 }
  0xc8   : > { %v579_v36 = vsel %vm561_vm3, %v3947_v32, %v578_v37  ;;  %v547_v48 = vadd.f32 %v488_v33, %v456_v17  ;;  %v820_v55 = vadd.f32 %v762_v52, %v729_v43  ;;  %v941_v0 = vrot.slane %v3091_v28, 7  ;;  %1933 = vmatpush1.bf16.msra.mxu0 %v2703_v60 }
  0xc9   : > { %v669_v51 = vsel %vm283_vm0, %v3948_v1, %v668_v58  ;;  %v760_v44 = vsel %vm742_vm4, %v3949_v59, %v759_v35  ;;  %v3169_v39 = vmul.f32 %v2784_v56, %v2784_v56  ;;  %v403_v30 = vrot.slane %v3095_v42, 1  ;;  %1170 = vmatmul.mubr.f32.gmra.mrb[2].mxu0 %v1017_v45  ;;  %1993 = vmatpush1.bf16.msra.mxu1 %v2687_v31 }
  0xca   : > { %v638_v40 = vadd.f32 %v579_v36, %v547_v48  ;;  %v3950_v10 = vrot.slane %v2959_v49, 6  ;;  %v494_v58 = vrot.slane %v3095_v42, 2  ;;  %v585_v52 = vrot.slane %v3095_v42, 3  ;;  %1995 = vmatprep.subr.bf16.mxu1 %v2691_v38  ;;  %1935 = vmatprep.subr.bf16.mxu0 %v2705_v61 }
  0xcb   : > { %v911_v29 = vadd.f32 %v853_v53, %v820_v55  ;;  %v3868_v17 = vrot.slane %v3169_v39, 1  ;;  %v3859_v46 = vrot.slane %v3169_v39, 2  ;;  %v3858_v33 = vrot.slane %v3169_v39, 3 }
  0xcc   : > { %v851_v37 = vsel %vm833_vm5, %v3950_v10, %v850_v47  ;;  %v728_v35 = vadd.f32 %v669_v51, %v638_v40  ;;  %v675_v43 = vrot.slane %v3095_v42, 4  ;;  %v3857_v9 = vrot.slane %v3169_v39, 4  ;;  %1937 = vmatpush1.bf16.msra.mxu0 %v2707_v62 }
  0xcd   : > { %v766_v32 = vrot.slane %v3095_v42, 5  ;;  %v1002_v36 = vadd.f32 %v944_v6, %v911_v29  ;;  %v405_v53 = vsel %vm379_vm1, %v403_v30, %v3868_v17  ;;  %v496_v47 = vsel %vm470_vm2, %v494_v58, %v3859_v46  ;;  %1997 = vmatpush1.bf16.msra.mxu1 %v2703_v60  ;;  %1939 = vmatprep.subr.bf16.mxu0 %v2711_v2 }
  0xce   : > { %v3856_v45 = vrot.slane %v3169_v39, 5  ;;  %v819_v48 = vadd.f32 %v760_v44, %v728_v35  ;;  %v459_v1 = vadd.f32 %v405_v53, %v3095_v42  ;;  %v857_v51 = vrot.slane %v3095_v42, 6  ;;  %1999 = vmatprep.subr.bf16.mxu1 %v2705_v61 }
  0xcf   : > { %v1022_v6 = vadd.f32 %v1002_v36, %v3085_v54  ;;  %v3951_v59 = vrot.slane %v2959_v49, 7  ;;  %v587_v30 = vsel %vm561_vm3, %v585_v52, %v3858_v33  ;;  %v3850_v40 = vrot.slane %v3169_v39, 6 }
  0xd0   : > { %v910_v10 = vadd.f32 %v851_v37, %v819_v48  ;;  %v550_v58 = vadd.f32 %v496_v47, %v459_v1  ;;  %v677_v44 = vsel %vm283_vm0, %v675_v43, %v3857_v9  ;;  %v948_v29 = vrot.slane %v3095_v42, 7  ;;  %1941 = vmatpush1.bf16.msra.mxu0 %v2713_v4 }
  0xd1   : > { %v942_v55 = vsel %vm924_vm6, %v3951_v59, %v941_v0  ;;  %v768_v0 = vsel %vm742_vm4, %v766_v32, %v3856_v45  ;;  %v3217_v52 = vmul.f32 %v2835_v27, %v2835_v27  ;;  %v3221_v37 = vmul.f32 %v2831_v26, %v2831_v26  ;;  %1246 = vmatprep.mubr.f32.mxu1 %v1022_v6 }
  0xd2   : > { %v1001_v35 = vadd.f32 %v942_v55, %v910_v10  ;;  %v641_v43 = vadd.f32 %v587_v30, %v550_v58  ;;  %v859_v32 = vsel %vm833_vm5, %v857_v51, %v3850_v40  ;;  %v3855_v42 = vrot.slane %v3169_v39, 7  ;;  %2001 = vmatpush1.bf16.msra.mxu1 %v2707_v62  ;;  %1943 = vmatprep.subr.bf16.mxu0 %v2715_v5 }
  0xd3   : > { %v413_v36 = vrot.slane %v3217_v52, 1  ;;  %v3849_v53 = vrot.slane %v3221_v37, 1  ;;  %v504_v47 = vrot.slane %v3217_v52, 2  ;;  %v3848_v48 = vrot.slane %v3221_v37, 2  ;;  %2003 = vmatprep.subr.bf16.mxu1 %v2711_v2 }
  0xd4   : > { %v1021_v1 = vadd.f32 %v1001_v35, %v3091_v28  ;;  %v731_v59 = vadd.f32 %v677_v44, %v641_v43  ;;  %v595_v55 = vrot.slane %v3217_v52, 3  ;;  %v3854_v30 = vrot.slane %v3221_v37, 3  ;;  %1945 = vmatpush1.bf16.msra.mxu0 %v2717_v11 }
  0xd5   : > { %v415_v51 = vsel %vm379_vm1, %v413_v36, %v3849_v53  ;;  %v506_v6 = vsel %vm470_vm2, %v504_v47, %v3848_v48  ;;  %v685_v10 = vrot.slane %v3217_v52, 4  ;;  %v3852_v58 = vrot.slane %v3221_v37, 4  ;;  %1947 = vmatprep.subr.bf16.mxu0 %v2719_v12 }
  0xd6   : > { %v822_v44 = vadd.f32 %v768_v0, %v731_v59  ;;  %v950_v35 = vsel %vm924_vm6, %v948_v29, %v3855_v42  ;;  %v463_v43 = vadd.f32 %v415_v51, %v3217_v52  ;;  %v776_v36 = vrot.slane %v3217_v52, 5  ;;  %1247 = vmatmul.mubr.f32.gmra.mrb[2].mxu1 %v1021_v1 }
  0xd7   : > { %v597_v47 = vsel %vm561_vm3, %v595_v55, %v3854_v30  ;;  %v3851_v48 = vrot.slane %v3221_v37, 5  ;;  %v867_v53 = vrot.slane %v3217_v52, 6  ;;  %v3853_v40 = vrot.slane %v3221_v37, 6  ;;  %2005 = vmatpush1.bf16.msra.mxu1 %v2713_v4 }
  0xd8   : > { %v913_v0 = vadd.f32 %v859_v32, %v822_v44  ;;  %v554_v59 = vadd.f32 %v506_v6, %v463_v43  ;;  %v687_v29 = vsel %vm283_vm0, %v685_v10, %v3852_v58  ;;  %v958_v55 = vrot.slane %v3217_v52, 7  ;;  %2007 = vmatprep.subr.bf16.mxu1 %v2715_v5  ;;  %1949 = vmatpush1.bf16.msra.mxu0 %v2721_v15 }
  0xd9   : > { %v778_v1 = vsel %vm742_vm4, %v776_v36, %v3851_v48  ;;  %v3270_v51 = vmul.f32 %v2891_v57, %v2891_v57  ;;  %v869_v10 = vsel %vm833_vm5, %v867_v53, %v3853_v40  ;;  %v3864_v44 = vrot.slane %v3221_v37, 7  ;;  %1951 = vmatprep.subr.bf16.mxu0 %v2723_v16 }
  0xda   : > { %v1004_v32 = vadd.f32 %v950_v35, %v913_v0  ;;  %v645_v6 = vadd.f32 %v597_v47, %v554_v59  ;;  %v3280_v43 = vmul.f32 %v2842_v34, %v2842_v34 }
  0xdb   : > { %v400_v52 = vrot.slane %v3270_v51, 1  ;;  %v491_v36 = vrot.slane %v3270_v51, 2  ;;  %v582_v48 = vrot.slane %v3270_v51, 3  ;;  %v672_v47 = vrot.slane %v3270_v51, 4  ;;  %2009 = vmatpush1.bf16.msra.mxu1 %v2717_v11 }
  0xdc   : > { %v1024_v58 = vadd.f32 %v1004_v32, %v3169_v39  ;;  %v735_v35 = vadd.f32 %v687_v29, %v645_v6  ;;  %v763_v0 = vrot.slane %v3270_v51, 5  ;;  %v3867_v53 = vrot.slane %v3280_v43, 1  ;;  %2011 = vmatprep.subr.bf16.mxu1 %v2719_v12  ;;  %1953 = vmatpush1.bf16.msra.mxu0 %v2725_v22 }
  0xdd   : > { %v3865_v59 = vrot.slane %v3280_v43, 2  ;;  %v3863_v40 = vrot.slane %v3280_v43, 3  ;;  %v3862_v30 = vrot.slane %v3280_v43, 4  ;;  %v3861_v32 = vrot.slane %v3280_v43, 5  ;;  %1955 = vmatprep.subr.bf16.mxu0 %v2727_v23 }
  0xde   : > { %v826_v29 = vadd.f32 %v778_v1, %v735_v35  ;;  %v854_v6 = vrot.slane %v3270_v51, 6  ;;  %v3860_v42 = vrot.slane %v3280_v43, 6  ;;  %1317 = vmatprep.mubr.f32.mxu0 %v1024_v58  ;;  %v960_v45 = vsel %vm924_vm6, %v958_v55, %v3864_v44 }
  0xdf   : > { %v402_v9 = vsel %vm379_vm1, %v400_v52, %v3867_v53  ;;  %v493_v33 = vsel %vm470_vm2, %v491_v36, %v3865_v59  ;;  %v584_v1 = vsel %vm561_vm3, %v582_v48, %v3863_v40  ;;  %v674_v58 = vsel %vm283_vm0, %v672_v47, %v3862_v30  ;;  %2013 = vmatpush1.bf16.msra.mxu1 %v2721_v15  ;;  %v3974_v15 = vld [vmem:[#allocation29_spill] sm:$0xff] }
  0xe0   : > { %v917_v35 = vadd.f32 %v869_v10, %v826_v29  ;;  %v458_v46 = vadd.f32 %v402_v9, %v3270_v51  ;;  %v765_v55 = vsel %vm742_vm4, %v763_v0, %v3861_v32  ;;  %v856_v52 = vsel %vm833_vm5, %v854_v6, %v3860_v42  ;;  %2015 = vmatprep.subr.bf16.mxu1 %v2723_v16 }
  0xe1   : > { %v341_v48 = vmul.f32 %v2945_v41, %v2945_v41  ;;  %v3327_v9 = vmul.f32 %v2959_v49, %v2959_v49  ;;  %v945_v47 = vrot.slane %v3270_v51, 7  ;;  %v3869_v0 = vrot.slane %v3280_v43, 7  ;;  %1957 = vmatpush1.bf16.msra.mxu0 %v2729_v24 }
  0xe2   : > { %v1008_v10 = vadd.f32 %v960_v45, %v917_v35  ;;  %v549_v36 = vadd.f32 %v493_v33, %v458_v46  ;;  %v3336_v32 = vmul.f32 %v3002_v18, %v3002_v18  ;;  %1959 = vmatprep.subr.bf16.mxu0 %v2731_v25 }
  0xe3   : > { %v410_v29 = vrot.slane %v341_v48, 1  ;;  %v3866_v6 = vrot.slane %v3327_v9, 1  ;;  %v501_v42 = vrot.slane %v341_v48, 2  ;;  %v3871_v44 = vrot.slane %v3327_v9, 2  ;;  %2017 = vmatpush1.bf16.msra.mxu1 %v2725_v22 }
  0xe4   : > { %v1028_v30 = vadd.f32 %v1008_v10, %v3221_v37  ;;  %v640_v40 = vadd.f32 %v584_v1, %v549_v36  ;;  %v592_v59 = vrot.slane %v341_v48, 3  ;;  %v3870_v33 = vrot.slane %v3327_v9, 3  ;;  %2019 = vmatprep.subr.bf16.mxu1 %v2727_v23 }
  0xe5   : > { %v412_v46 = vsel %vm379_vm1, %v410_v29, %v3866_v6  ;;  %v682_v45 = vrot.slane %v341_v48, 4  ;;  %v503_v10 = vsel %vm470_vm2, %v501_v42, %v3871_v44  ;;  %v773_v36 = vrot.slane %v341_v48, 5 }
  0xe6   : > { %v730_v1 = vadd.f32 %v674_v58, %v640_v40  ;;  %v462_v35 = vadd.f32 %v412_v46, %v341_v48  ;;  %1394 = vmatprep.mubr.f32.mxu1 %v1028_v30  ;;  %v947_v29 = vsel %vm924_vm6, %v945_v47, %v3869_v0  ;;  %v594_v6 = vsel %vm561_vm3, %v592_v59, %v3870_v33 }
  0xe7   : > { %v3872_v53 = vrot.slane %v3327_v9, 5  ;;  %v864_v17 = vrot.slane %v341_v48, 6  ;;  %v3874_v58 = vrot.slane %v3327_v9, 6  ;;  %v955_v46 = vrot.slane %v341_v48, 7  ;;  %2021 = vmatpush1.bf16.msra.mxu1 %v2729_v24 }
  0xe8   : > { %v821_v51 = vadd.f32 %v765_v55, %v730_v1  ;;  %v553_v40 = vadd.f32 %v503_v10, %v462_v35  ;;  %v3952_v42 = vrot.slane %v3327_v9, 4  ;;  %v3873_v47 = vrot.slane %v3327_v9, 7  ;;  %2023 = vmatprep.subr.bf16.mxu1 %v2731_v25 }
  0xe9   : > { %v408_v59 = vrot.slane %v3336_v32, 1  ;;  %v499_v0 = vrot.slane %v3336_v32, 2  ;;  %v775_v1 = vsel %vm742_vm4, %v773_v36, %v3872_v53  ;;  %v590_v35 = vrot.slane %v3336_v32, 3  ;;  %v3955_v53 = vld [vmem:[#allocation23_spill] sm:$0xff] }
  0xea   : > { %v684_v30 = vsel %vm283_vm0, %v682_v45, %v3952_v42  ;;  %v912_v55 = vadd.f32 %v856_v52, %v821_v51  ;;  %v644_v48 = vadd.f32 %v594_v6, %v553_v40  ;;  %v866_v45 = vsel %vm833_vm5, %v864_v17, %v3874_v58  ;;  %1961 = vmatpush1.bf16.msra.mxu0 %v3955_v53 }
  0xeb   : > { %v3953_v10 = vrot.slane %v3169_v39, 1  ;;  %v3954_v33 = vrot.slane %v3169_v39, 2  ;;  %v680_v52 = vrot.slane %v3336_v32, 4  ;;  %v957_v36 = vsel %vm924_vm6, %v955_v46, %v3873_v47  ;;  %2025 = vmatpush1.bf16.msra.mxu1 %v3955_v53 }
  0xec   : > { %v1003_v6 = vadd.f32 %v947_v29, %v912_v55  ;;  %v734_v51 = vadd.f32 %v684_v30, %v644_v48  ;;  %v3956_v17 = vrot.slane %v3169_v39, 3  ;;  %v953_v29 = vrot.slane %v3336_v32, 7  ;;  %v3957_v30 = vld [vmem:[#allocation24_spill] sm:$0xff] }
  0xed   : > { %v409_v42 = vsel %vm379_vm1, %v3953_v10, %v408_v59  ;;  %v500_v44 = vsel %vm470_vm2, %v3954_v33, %v499_v0  ;;  %v771_v0 = vrot.slane %v3336_v32, 5  ;;  %v862_v33 = vrot.slane %v3336_v32, 6  ;;  %1963 = vmatprep.subr.bf16.mxu0 %v3957_v30  ;;  %2027 = vmatprep.subr.bf16.mxu1 %v3957_v30 }
  0xee   : > { %v461_v40 = vadd.f32 %v409_v42, %v3169_v39  ;;  %v591_v59 = vsel %vm561_vm3, %v3956_v17, %v590_v35  ;;  %v825_v46 = vadd.f32 %v775_v1, %v734_v51  ;;  %v3958_v48 = vrot.slane %v3169_v39, 4 }
  0xef   : > { %v3402_v42 = vadd.f32 %v1003_v6, %v3280_v43  ;;  %v3959_v35 = vrot.slane %v3169_v39, 5  ;;  %v3960_v47 = vrot.slane %v3169_v39, 6  ;;  %v3412_v30 = vmul.f32 %v3085_v54, %v3085_v54 }
  0xf0   : > { %v552_v55 = vadd.f32 %v500_v44, %v461_v40  ;;  %v681_v10 = vsel %vm283_vm0, %v3958_v48, %v680_v52  ;;  %v916_v44 = vadd.f32 %v866_v45, %v825_v46  ;;  %v3961_v51 = vrot.slane %v3169_v39, 7  ;;  %v3962_v40 = vld [vmem:[#allocation25_spill] sm:$0xff] }
  0xf1   : > { %v772_v17 = vsel %vm742_vm4, %v3959_v35, %v771_v0  ;;  %v863_v58 = vsel %vm833_vm5, %v3960_v47, %v862_v33  ;;  %v3419_v6 = vmul.f32 %v3008_v21, %v3008_v21  ;;  %1965 = vmatpush1.bf16.msra.mxu0 %v3962_v40  ;;  %2029 = vmatpush1.bf16.msra.mxu1 %v3962_v40  ;;  %v418_v47 = vrot.slane %v3412_v30, 1 }
  0xf2   : > { %v643_v1 = vadd.f32 %v591_v59, %v552_v55  ;;  %v954_v52 = vsel %vm924_vm6, %v3961_v51, %v953_v29  ;;  %v509_v0 = vrot.slane %v3412_v30, 2  ;;  %v600_v33 = vrot.slane %v3412_v30, 3  ;;  %v3963_v59 = vld [vmem:[#allocation26_spill] sm:$0xff] }
  0xf3   : > { %v690_v45 = vrot.slane %v3412_v30, 4  ;;  %1967 = vmatprep.subr.bf16.mxu0 %v3963_v59  ;;  %2031 = vmatprep.subr.bf16.mxu1 %v3963_v59  ;;  %v1007_v39 = vadd.f32 %v957_v36, %v916_v44  ;;  %v3431_v46 = vmul.f32 %v3091_v28, %v3091_v28  ;;  %v3964_v55 = vrot.slane %v3221_v37, 1 }
  0xf4   : > { %v733_v29 = vadd.f32 %v681_v10, %v643_v1  ;;  %v3965_v35 = vrot.slane %v3221_v37, 2  ;;  %v781_v40 = vrot.slane %v3412_v30, 5  ;;  %v872_v53 = vrot.slane %v3412_v30, 6 }
  0xf5   : > { %v419_v48 = vsel %vm379_vm1, %v3964_v55, %v418_v47  ;;  %v3966_v10 = vrot.slane %v3221_v37, 3  ;;  %v3967_v1 = vrot.slane %v3221_v37, 4  ;;  %v3968_v47 = vld [vmem:[#allocation27_spill] sm:$0xff]  ;;  %v963_v55 = vrot.slane %v3412_v30, 7 }
  0xf6   : > { %v510_v51 = vsel %vm470_vm2, %v3965_v35, %v509_v0  ;;  %v824_v25 = vadd.f32 %v772_v17, %v733_v29  ;;  %v465_v36 = vadd.f32 %v419_v48, %v3221_v37  ;;  %1969 = vmatpush1.bf16.msra.mxu0 %v3968_v47  ;;  %2033 = vmatpush1.bf16.msra.mxu1 %v3968_v47  ;;  %v406_v17 = vrot.slane %v3419_v6, 1  ;;  %v3969_v48 = vld [vmem:[#allocation28_spill] sm:$0xff] }
  0xf7   : > { %v601_v44 = vsel %vm561_vm3, %v3966_v10, %v600_v33  ;;  %v691_v59 = vsel %vm283_vm0, %v3967_v1, %v690_v45  ;;  %v1027_v0 = vadd.f32 %v1007_v39, %v3327_v9  ;;  %v497_v29 = vrot.slane %v3419_v6, 2  ;;  %1971 = vmatprep.subr.bf16.mxu0 %v3969_v48  ;;  %2035 = vmatprep.subr.bf16.mxu1 %v3969_v48 }
  0xf8   : > { %v915_v33 = vadd.f32 %v863_v58, %v824_v25  ;;  %v556_v35 = vadd.f32 %v510_v51, %v465_v36  ;;  %v588_v45 = vrot.slane %v3419_v6, 3  ;;  %v678_v10 = vrot.slane %v3419_v6, 4 }
  0xf9   : > { %v3970_v1 = vrot.slane %v3221_v37, 5  ;;  %v3971_v47 = vrot.slane %v3280_v43, 1  ;;  %v3972_v23 = vrot.slane %v3280_v43, 2  ;;  %v769_v48 = vrot.slane %v3419_v6, 5 }
  0xfa   : > { %v1006_v25 = vadd.f32 %v954_v52, %v915_v33  ;;  %v647_v58 = vadd.f32 %v601_v44, %v556_v35  ;;  %v3973_v51 = vrot.slane %v3221_v37, 6  ;;  %1973 = vmatpush1.bf16.msra.mxu0 %v3974_v15  ;;  %2037 = vmatpush1.bf16.msra.mxu1 %v3974_v15  ;;  %v3977_v52 = vrot.slane %v3280_v43, 4 }
  0xfb   : > { %v782_v39 = vsel %vm742_vm4, %v3970_v1, %v781_v40  ;;  %v407_v24 = vsel %vm379_vm1, %v3971_v47, %v406_v17  ;;  %v498_v22 = vsel %vm470_vm2, %v3972_v23, %v497_v29  ;;  %v3975_v40 = vrot.slane %v3221_v37, 7  ;;  %v3978_v29 = vld [vmem:[#allocation30_spill] sm:$0xff] }
  0xfc   : > { %v873_v36 = vsel %vm833_vm5, %v3973_v51, %v872_v53  ;;  %v460_v16 = vadd.f32 %v407_v24, %v3280_v43  ;;  %v3976_v23 = vrot.slane %v3280_v43, 3  ;;  %v679_v44 = vsel %vm283_vm0, %v3977_v52, %v678_v10  ;;  %1975 = vmatprep.subr.bf16.mxu0 %v3978_v29  ;;  %2039 = vmatprep.subr.bf16.mxu1 %v3978_v29 }
  0xfd   : > { %v964_v47 = vsel %vm924_vm6, %v3975_v40, %v963_v55  ;;  %v860_v53 = vrot.slane %v3419_v6, 6  ;;  %v737_v24 = vadd.f32 %v691_v59, %v647_v58  ;;  %v3979_v37 = vrot.slane %v3280_v43, 5 }
  0xfe   : > { %v589_v17 = vsel %vm561_vm3, %v3976_v23, %v588_v45  ;;  %v551_v33 = vadd.f32 %v498_v22, %v460_v16  ;;  %v416_v35 = vrot.slane %v3431_v46, 1  ;;  %v1026_v45 = vadd.f32 %v1006_v25, %v3336_v32  ;;  %1977 = vmatpush1.bf16.msra.mxu0 %v2769_v50  ;;  %2041 = vmatpush1.bf16.msra.mxu1 %v2769_v50 }
  0xff   : > { %v770_v55 = vsel %vm742_vm4, %v3979_v37, %v769_v48  ;;  %v951_v1 = vrot.slane %v3419_v6, 7  ;;  %v507_v10 = vrot.slane %v3431_v46, 2  ;;  %v598_v51 = vrot.slane %v3431_v46, 3  ;;  %2043 = vmatprep.subr.bf16.mxu0 %v2661_v3  ;;  %2106 = vmatprep.subr.bf16.mxu1 %v2661_v3 }
 0x100   : > { %v828_v40 = vadd.f32 %v782_v39, %v737_v24  ;;  %v642_v23 = vadd.f32 %v589_v17, %v551_v33  ;;  %v3980_v52 = vrot.slane %v3327_v9, 1  ;;  %v688_v22 = vrot.slane %v3431_v46, 4 }
 0x101   : > { %v3981_v32 = vrot.slane %v3280_v43, 6  ;;  %v3982_v25 = vrot.slane %v3327_v9, 2  ;;  %v779_v58 = vrot.slane %v3431_v46, 5  ;;  %v3983_v33 = vrot.slane %v3327_v9, 3  ;;  %1318 = vmatmul.mubr.f32.vlgmr.msra.gmra.mrb[4].mxu0 %v3402_v42  ;;  %1395 = vmatmul.mubr.f32.vlgmr.msra.gmra.mrb[4].mxu1 %v1027_v0 }
 0x102   : > { %v417_v16 = vsel %vm379_vm1, %v3980_v52, %v416_v35  ;;  %v919_v17 = vadd.f32 %v873_v36, %v828_v40  ;;  %v732_v24 = vadd.f32 %v679_v44, %v642_v23  ;;  %v870_v44 = vrot.slane %v3431_v46, 6  ;;  %2045 = vmatpush1.bf16.msra.mxu0 %v2663_v7  ;;  %2122 = vmatpush1.bf16.msra.mxu1 %v2663_v7 }
 0x103   : > { %v861_v59 = vsel %vm833_vm5, %v3981_v32, %v860_v53  ;;  %v464_v48 = vadd.f32 %v417_v16, %v3327_v9  ;;  %v508_v39 = vsel %vm470_vm2, %v3982_v25, %v507_v10  ;;  %v599_v37 = vsel %vm561_vm3, %v3983_v33, %v598_v51  ;;  %1323 = vmatprep.mubr.f32.mxu0 %v1026_v45 }
 0x104   : > { %v3984_v53 = vrot.slane %v3280_v43, 7  ;;  %v3985_v16 = vrot.slane %v3327_v9, 4  ;;  %v3521_v32 = vmul.f32 %v2835_v27, %v2788_v63  ;;  %v1010_v3 = vadd.f32 %v964_v47, %v919_v17  ;;  %2047 = vmatprep.subr.bf16.mxu0 %v2665_v8  ;;  %2107 = vmatprep.subr.bf16.mxu1 %v2665_v8 }
 0x105   : > { %v555_v52 = vadd.f32 %v508_v39, %v464_v48  ;;  %v823_v36 = vadd.f32 %v770_v55, %v732_v24  ;;  %v961_v43 = vrot.slane %v3431_v46, 7  ;;  %v3986_v51 = vrot.slane %v3327_v9, 5 }
 0x106   : > { %v952_v35 = vsel %vm924_vm6, %v3984_v53, %v951_v1  ;;  %v689_v10 = vsel %vm283_vm0, %v3985_v16, %v688_v22  ;;  %v3533_v63 = vmul.f32 %v2831_v26, %v2784_v56  ;;  %v423_v27 = vrot.slane %v3521_v32, 1  ;;  %2049 = vmatpush1.bf16.msra.mxu0 %v2671_v13  ;;  %2123 = vmatpush1.bf16.msra.mxu1 %v2671_v13 }
 0x107   : > { %v646_v1 = vadd.f32 %v599_v37, %v555_v52  ;;  %v780_v40 = vsel %vm742_vm4, %v3986_v51, %v779_v58  ;;  %v1030_v42 = vadd.f32 %v1010_v3, %v3412_v30  ;;  %v914_v0 = vadd.f32 %v861_v59, %v823_v36  ;;  %2051 = vmatprep.subr.bf16.mxu0 %v2675_v14 }
 0x108   : > { %v514_v47 = vrot.slane %v3521_v32, 2  ;;  %v605_v7 = vrot.slane %v3521_v32, 3  ;;  %v424_v23 = vrot.slane %v3533_v63, 1  ;;  %v515_v56 = vrot.slane %v3533_v63, 2  ;;  %2108 = vmatprep.subr.bf16.mxu1 %v2675_v14 }
 0x109   : > { %v736_v55 = vadd.f32 %v689_v10, %v646_v1  ;;  %v606_v26 = vrot.slane %v3533_v63, 3  ;;  %1400 = vmatprep.mubr.f32.mxu1 %v1030_v42  ;;  %v1005_v45 = vadd.f32 %v952_v35, %v914_v0  ;;  %v3987_v30 = vrot.slane %v3327_v9, 6 }
 0x10a   : > { %v3988_v59 = vrot.slane %v3327_v9, 7  ;;  %v695_v25 = vrot.slane %v3521_v32, 4  ;;  %v425_v8 = vsel %vm379_vm1, %v423_v27, %v424_v23  ;;  %v516_v58 = vsel %vm470_vm2, %v514_v47, %v515_v56  ;;  %2053 = vmatpush1.bf16.msra.mxu0 %v2679_v19  ;;  %2124 = vmatpush1.bf16.msra.mxu1 %v2679_v19 }
 0x10b   : > { %v871_v22 = vsel %vm833_vm5, %v3987_v30, %v870_v44  ;;  %v827_v39 = vadd.f32 %v780_v40, %v736_v55  ;;  %v696_v17 = vrot.slane %v3533_v63, 4  ;;  %v1025_v24 = vadd.f32 %v1005_v45, %v3419_v6  ;;  %2055 = vmatprep.subr.bf16.mxu0 %v2683_v20  ;;  %2109 = vmatprep.subr.bf16.mxu1 %v2683_v20 }
 0x10c   : > { %v962_v48 = vsel %vm924_vm6, %v3988_v59, %v961_v43  ;;  %v467_v9 = vadd.f32 %v425_v8, %v3521_v32  ;;  %v786_v33 = vrot.slane %v3521_v32, 5  ;;  %v787_v37 = vrot.slane %v3533_v63, 5 }
 0x10d   : > { %v918_v53 = vadd.f32 %v871_v22, %v827_v39  ;;  %v607_v13 = vsel %vm561_vm3, %v605_v7, %v606_v26  ;;  %1324 = vmatmul.mubr.f32.gmra.mrb[6].mxu0 %v1025_v24  ;;  %v3565_v52 = vmul.f32 %v3085_v54, %v3002_v18  ;;  %v697_v14 = vsel %vm283_vm0, %v695_v25, %v696_v17 }
 0x10e   : > { %v558_v35 = vadd.f32 %v516_v58, %v467_v9  ;;  %v877_v16 = vrot.slane %v3521_v32, 6  ;;  %v878_v10 = vrot.slane %v3533_v63, 6  ;;  %v788_v36 = vsel %vm742_vm4, %v786_v33, %v787_v37  ;;  %2057 = vmatpush1.bf16.msra.mxu0 %v2687_v31  ;;  %2125 = vmatpush1.bf16.msra.mxu1 %v2687_v31 }
 0x10f   : > { %v1009_v6 = vadd.f32 %v962_v48, %v918_v53  ;;  %v428_v18 = vrot.slane %v3565_v52, 1  ;;  %v519_v54 = vrot.slane %v3565_v52, 2  ;;  %v968_v19 = vrot.slane %v3521_v32, 7  ;;  %2059 = vmatprep.subr.bf16.mxu0 %v2691_v38  ;;  %2110 = vmatprep.subr.bf16.mxu1 %v2691_v38 }
 0x110   : > { %v649_v3 = vadd.f32 %v607_v13, %v558_v35  ;;  %v969_v43 = vrot.slane %v3533_v63, 7  ;;  %v610_v1 = vrot.slane %v3565_v52, 3  ;;  %v700_v27 = vrot.slane %v3565_v52, 4  ;;  %v3991_v35 = vld [vmem:[#allocation19_spill] sm:$0xff] }
 0x111   : > { %v1029_v44 = vadd.f32 %v1009_v6, %v3431_v46  ;;  %v429_v40 = vsel %vm379_vm1, %v424_v23, %v428_v18  ;;  %v520_v20 = vsel %vm470_vm2, %v515_v56, %v519_v54  ;;  %v879_v42 = vsel %vm833_vm5, %v877_v16, %v878_v10  ;;  %v3993_v54 = vld [vmem:[#allocation21_spill] sm:$0xff] }
 0x112   : > { %v739_v51 = vadd.f32 %v697_v14, %v649_v3  ;;  %v469_v46 = vadd.f32 %v429_v40, %v3533_v63  ;;  %v611_v0 = vsel %vm561_vm3, %v606_v26, %v610_v1  ;;  %v791_v47 = vrot.slane %v3565_v52, 5  ;;  %2061 = vmatpush1.bf16.msra.mxu0 %v2703_v60  ;;  %2126 = vmatpush1.bf16.msra.mxu1 %v2703_v60 }
 0x113   : > { %1401 = vmatmul.mubr.f32.gmra.mrb[6].mxu1 %v1029_v44  ;;  %v970_v7 = vsel %vm924_vm6, %v968_v19, %v969_v43  ;;  %v701_v56 = vsel %vm283_vm0, %v696_v17, %v700_v27  ;;  %v882_v45 = vrot.slane %v3565_v52, 6  ;;  %2063 = vmatprep.subr.bf16.mxu0 %v2705_v61  ;;  %v973_v38 = vrot.slane %v3565_v52, 7  ;;  %v3989_v17 = vld [vmem:[#allocation17_spill] sm:$0xff] }
 0x114   : > { %v830_v32 = vadd.f32 %v788_v36, %v739_v51  ;;  %v560_v55 = vadd.f32 %v520_v20, %v469_v46  ;;  %v792_v30 = vsel %vm742_vm4, %v787_v37, %v791_v47  ;;  %2111 = vmatprep.subr.bf16.mxu1 %v2705_v61  ;;  %v3606_v60 = vmul.f32 %v2945_v41, %v2891_v57  ;;  %v3990_v37 = vld [vmem:[#allocation18_spill] sm:$0xff] }
 0x115   : > { %v883_v48 = vsel %vm833_vm5, %v878_v10, %v882_v45  ;;  %v3610_v39 = vmul.f32 %v2959_v49, %v2842_v34  ;;  %v974_v61 = vsel %vm924_vm6, %v969_v43, %v973_v38  ;;  %v3992_v10 = vld [vmem:[#allocation20_spill] sm:$0xff]  ;;  %v3994_v51 = vld [vmem:[#allocation22_spill] sm:$0xff]  ;;  %v3997_v45 = vld [vmem:[#allocation25_spill] sm:$0xff] }
 0x116   : > { %v921_v23 = vadd.f32 %v879_v42, %v830_v32  ;;  %v651_v31 = vadd.f32 %v611_v0, %v560_v55  ;;  %2065 = vmatpush1.bf16.msra.mxu0 %v2707_v62  ;;  %2127 = vmatpush1.bf16.msra.mxu1 %v2707_v62  ;;  %v420_v34 = vrot.slane %v3606_v60, 1  ;;  %v602_v9 = vrot.slane %v3606_v60, 3  ;;  %v3995_v42 = vld [vmem:[#allocation23_spill] sm:$0xff] }
 0x117   : > { %2067 = vmatprep.subr.bf16.mxu0 %v2711_v2  ;;  %2112 = vmatprep.subr.bf16.mxu1 %v2711_v2  ;;  %v421_v49 = vrot.slane %v3610_v39, 1  ;;  %v603_v33 = vrot.slane %v3610_v39, 3  ;;  %v692_v6 = vrot.slane %v3606_v60, 4  ;;  %v693_v14 = vrot.slane %v3610_v39, 4 }
 0x118   : > { %v1012_v26 = vadd.f32 %v970_v7, %v921_v23  ;;  %v741_v22 = vadd.f32 %v701_v56, %v651_v31  ;;  %v783_v19 = vrot.slane %v3606_v60, 5  ;;  %v784_v43 = vrot.slane %v3610_v39, 5  ;;  %v3996_v7 = vld [vmem:[#allocation24_spill] sm:$0xff] }
 0x119   : > { %v422_v2 = vsel %vm379_vm1, %v420_v34, %v421_v49  ;;  %v694_v44 = vsel %vm283_vm0, %v692_v6, %v693_v14  ;;  %v874_v32 = vrot.slane %v3606_v60, 6  ;;  %v875_v0 = vrot.slane %v3610_v39, 6 }
 0x11a   : > { %v1032_v59 = vadd.f32 %v1012_v26, %v3533_v63  ;;  %v832_v25 = vadd.f32 %v792_v30, %v741_v22  ;;  %v3617_v63 = vmul.f32 %v3091_v28, %v3008_v21  ;;  %2069 = vmatpush1.bf16.msra.mxu0 %v2713_v4  ;;  %2128 = vmatpush1.bf16.msra.mxu1 %v2713_v4  ;;  %v511_v21 = vrot.slane %v3606_v60, 2  ;;  %v3998_v22 = vld [vmem:[#allocation26_spill] sm:$0xff] }
 0x11b   : > { %2071 = vmatprep.subr.bf16.mxu0 %v2715_v5  ;;  %2113 = vmatprep.subr.bf16.mxu1 %v2715_v5  ;;  %v512_v28 = vrot.slane %v3610_v39, 2  ;;  %v466_v5 = vadd.f32 %v422_v2, %v3606_v60  ;;  %v785_v46 = vsel %vm742_vm4, %v783_v19, %v784_v43  ;;  %v876_v31 = vsel %vm833_vm5, %v874_v32, %v875_v0 }
 0x11c   : > { %1471 = vmatprep.mubr.f32.mxu0 %v1032_v59  ;;  %v923_v8 = vadd.f32 %v883_v48, %v832_v25  ;;  %v426_v62 = vrot.slane %v3617_v63, 1  ;;  %v517_v58 = vrot.slane %v3617_v63, 2  ;;  %v698_v36 = vrot.slane %v3617_v63, 4 }
 0x11d   : > { %v513_v24 = vsel %vm470_vm2, %v511_v21, %v512_v28  ;;  %v789_v20 = vrot.slane %v3617_v63, 5  ;;  %v880_v23 = vrot.slane %v3617_v63, 6  ;;  %v965_v26 = vrot.slane %v3606_v60, 7  ;;  %v4000_v60 = vld [vmem:[#allocation28_spill] sm:$0xff] }
 0x11e   : > { %v1014_v57 = vadd.f32 %v974_v61, %v923_v8  ;;  %2073 = vmatpush1.bf16.msra.mxu0 %v2717_v11  ;;  %2129 = vmatpush1.bf16.msra.mxu1 %v2717_v11  ;;  %v427_v4 = vsel %vm379_vm1, %v421_v49, %v426_v62  ;;  %v518_v53 = vsel %vm470_vm2, %v512_v28, %v517_v58  ;;  %v966_v30 = vrot.slane %v3610_v39, 7  ;;  %v3999_v61 = vld [vmem:[#allocation27_spill] sm:$0xff] }
 0x11f   : > { %2075 = vmatprep.subr.bf16.mxu0 %v2719_v12  ;;  %2114 = vmatprep.subr.bf16.mxu1 %v2719_v12  ;;  %v468_v11 = vadd.f32 %v427_v4, %v3610_v39  ;;  %v608_v12 = vrot.slane %v3617_v63, 3  ;;  %v557_v13 = vadd.f32 %v513_v24, %v466_v5  ;;  %v699_v40 = vsel %vm283_vm0, %v693_v14, %v698_v36 }
 0x120   : > { %v1034_v41 = vadd.f32 %v1014_v57, %v3565_v52  ;;  %v604_v52 = vsel %vm561_vm3, %v602_v9, %v603_v33  ;;  %v790_v55 = vsel %vm742_vm4, %v784_v43, %v789_v20  ;;  %v881_v59 = vsel %vm833_vm5, %v875_v0, %v880_v23 }
 0x121   : > { %v559_v16 = vadd.f32 %v518_v53, %v468_v11  ;;  %v609_v3 = vsel %vm561_vm3, %v603_v33, %v608_v12  ;;  %v648_v18 = vadd.f32 %v604_v52, %v557_v13  ;;  %v971_v48 = vrot.slane %v3617_v63, 7 }
 0x122   : > { %1477 = vmatprep.mubr.f32.mxu1 %v1034_v41  ;;  %2077 = vmatpush1.bf16.msra.mxu0 %v3989_v17  ;;  %v967_v8 = vsel %vm924_vm6, %v965_v26, %v966_v30 }
 0x123   : > { %2130 = vmatpush1.bf16.msra.mxu1 %v3989_v17  ;;  %2079 = vmatprep.subr.bf16.mxu0 %v3990_v37  ;;  %v650_v1 = vadd.f32 %v609_v3, %v559_v16  ;;  %v738_v27 = vadd.f32 %v694_v44, %v648_v18  ;;  %v972_v34 = vsel %vm924_vm6, %v966_v30, %v971_v48 }
 0x124   : > { %2115 = vmatprep.subr.bf16.mxu1 %v3990_v37 }
 0x125   : > { %v740_v47 = vadd.f32 %v699_v40, %v650_v1  ;;  %v829_v56 = vadd.f32 %v785_v46, %v738_v27 }
 0x126   : > { %2081 = vmatpush1.bf16.msra.mxu0 %v3991_v35 }
 0x127   : > { %2131 = vmatpush1.bf16.msra.mxu1 %v3991_v35  ;;  %2083 = vmatprep.subr.bf16.mxu0 %v3992_v10  ;;  %v831_v38 = vadd.f32 %v790_v55, %v740_v47  ;;  %v920_v25 = vadd.f32 %v876_v31, %v829_v56 }
 0x128   : > { %2116 = vmatprep.subr.bf16.mxu1 %v3992_v10 }
 0x129   : > { %v922_v57 = vadd.f32 %v881_v59, %v831_v38  ;;  %v1011_v49 = vadd.f32 %v967_v8, %v920_v25 }
 0x12a   : > { %2085 = vmatpush1.bf16.msra.mxu0 %v3993_v54 }
 0x12b   : > { %2132 = vmatpush1.bf16.msra.mxu1 %v3993_v54  ;;  %2087 = vmatprep.subr.bf16.mxu0 %v3994_v51  ;;  %v1013_v62 = vadd.f32 %v972_v34, %v922_v57  ;;  %v1031_v41 = vadd.f32 %v1011_v49, %v3610_v39 }
 0x12c   : > { %2117 = vmatprep.subr.bf16.mxu1 %v3994_v51 }
 0x12d   : > { %v1033_v2 = vadd.f32 %v1013_v62, %v3617_v63 }
 0x12e   : > { %2089 = vmatpush1.bf16.msra.mxu0 %v3995_v42 }
 0x12f   : > { %2133 = vmatpush1.bf16.msra.mxu1 %v3995_v42  ;;  %2091 = vmatprep.subr.bf16.mxu0 %v3996_v7 }
 0x130   : > { %2118 = vmatprep.subr.bf16.mxu1 %v3996_v7 }
 0x132   : > { %2093 = vmatpush1.bf16.msra.mxu0 %v3997_v45 }
 0x133   : > { %2134 = vmatpush1.bf16.msra.mxu1 %v3997_v45  ;;  %2095 = vmatprep.subr.bf16.mxu0 %v3998_v22 }
 0x134   : > { %2119 = vmatprep.subr.bf16.mxu1 %v3998_v22 }
 0x136   : > { %2097 = vmatpush1.bf16.msra.mxu0 %v3999_v61 }
 0x137   : > { %2135 = vmatpush1.bf16.msra.mxu1 %v3999_v61  ;;  %2099 = vmatprep.subr.bf16.mxu0 %v4000_v60 }
 0x138   : > { %2120 = vmatprep.subr.bf16.mxu1 %v4000_v60 }
 0x13a   : > { %2101 = vmatpush1.bf16.msra.mxu0 %v3974_v15 }
 0x13b   : > { %2136 = vmatpush1.bf16.msra.mxu1 %v3974_v15  ;;  %2103 = vmatprep.subr.bf16.mxu0 %v3978_v29 }
 0x13c   : > { %2121 = vmatprep.subr.bf16.mxu1 %v3978_v29 }
 0x13e   : > { %2105 = vmatpush1.bf16.msra.mxu0 %v2769_v50 }
 0x13f   : > { %2137 = vmatpush1.bf16.msra.mxu1 %v2769_v50 }
 0x141   : > { %1472 = vmatmul.mubr.f32.vlgmr.msra.gmra.mrb[8].mxu0 %v1031_v41 }
 0x142   : > { %1478 = vmatmul.mubr.f32.vlgmr.msra.gmra.mrb[8].mxu1 %v1033_v2 }
 0x18a   : > { %v1165_v21 = vpop.f32.mrb[0].mxu0 }
 0x18b   : > { %v1485_v4 = vmul.f32 0.0013717421, %v1165_v21  ;;  %v1167_v58 = vpop.f32.mrb[1].mxu0 }
 0x18c   : > { %v1486_v15 = vmul.f32 0.0013717421, %v1167_v58 }
 0x18d   : > { %v1521_v54 = vmul.f32 2.0, %v1485_v4  ;;  %v1533_v1 = vmul.f32 %v1485_v4, %v1485_v4 }
 0x18e   : > { %v1522_v19 = vmul.f32 2.0, %v1486_v15  ;;  %v1534_v40 = vmul.f32 %v1486_v15, %v1486_v15 }
 0x18f   : > { %v1242_v28 = vpop.f32.mrb[0].mxu1  ;;  %v1525_v27 = vmul.f32 %v1521_v54, %v1165_v21  ;;  %v1537_v55 = vmul.f32 729.0, %v1533_v1 }
 0x190   : > { %v1244_v5 = vpop.f32.mrb[1].mxu1  ;;  %v1489_v17 = vmul.f32 0.0013717421, %v1242_v28  ;;  %v3698_v24 = vmul.f32 %v1485_v4, %v1242_v28  ;;  %v1526_v0 = vmul.f32 %v1522_v19, %v1167_v58  ;;  %v1538_v30 = vmul.f32 729.0, %v1534_v40 }
 0x191   : > { %v1490_v29 = vmul.f32 0.0013717421, %v1244_v5  ;;  %v3700_v9 = vmul.f32 %v1486_v15, %v1244_v5 }
 0x192   : > { %v3702_v39 = vmul.f32 %v1489_v17, %v1165_v21  ;;  %v3704_v33 = vmul.f32 %v1489_v17, %v1485_v4  ;;  %v1545_v44 = vmul.f32 2.0, %v1489_v17  ;;  %v1557_v51 = vmul.f32 %v1489_v17, %v1489_v17 }
 0x193   : > { %v3706_v63 = vmul.f32 %v1490_v29, %v1167_v58  ;;  %v3708_v50 = vmul.f32 %v1490_v29, %v1486_v15  ;;  %v1546_v43 = vmul.f32 2.0, %v1490_v29  ;;  %v1558_v20 = vmul.f32 %v1490_v29, %v1490_v29 }
 0x194   : > { %v1549_v42 = vmul.f32 %v1545_v44, %v1242_v28  ;;  %v1561_v56 = vmul.f32 729.0, %v1557_v51 }
 0x195   : > { %v1550_v47 = vmul.f32 %v1546_v43, %v1244_v5  ;;  %v1562_v22 = vmul.f32 729.0, %v1558_v20 }
 0x19c   : > { %v1171_v11 = vpop.f32.mrb[2].mxu0 }
 0x19d   : > { %v1173_v37 = vpop.f32.mrb[3].mxu0  ;;  %v1487_v53 = vmul.f32 0.0013717421, %v1171_v11 }
 0x19e   : > { %v1488_v12 = vmul.f32 0.0013717421, %v1173_v37 }
 0x19f   : > { %v1523_v25 = vmul.f32 2.0, %v1487_v53  ;;  %v1535_v34 = vmul.f32 %v1487_v53, %v1487_v53 }
 0x1a0   : > { %v1524_v57 = vmul.f32 2.0, %v1488_v12  ;;  %v1536_v62 = vmul.f32 %v1488_v12, %v1488_v12 }
 0x1a1   : > { %v1527_v41 = vmul.f32 %v1523_v25, %v1171_v11  ;;  %v1539_v5 = vmul.f32 729.0, %v1535_v34 }
 0x1a2   : > { %v1528_v4 = vmul.f32 %v1524_v57, %v1173_v37  ;;  %v1540_v44 = vmul.f32 729.0, %v1536_v62 }
 0x1a9   : > { %v1248_v13 = vpop.f32.mrb[2].mxu1 }
 0x1aa   : > { %v1491_v35 = vmul.f32 0.0013717421, %v1248_v13  ;;  %v3710_v52 = vmul.f32 %v1487_v53, %v1248_v13  ;;  %v1250_v6 = vpop.f32.mrb[3].mxu1 }
 0x1ab   : > { %v1492_v14 = vmul.f32 0.0013717421, %v1250_v6  ;;  %v3712_v16 = vmul.f32 %v1488_v12, %v1250_v6 }
 0x1ac   : > { %v3714_v10 = vmul.f32 %v1491_v35, %v1171_v11  ;;  %v3716_v3 = vmul.f32 %v1491_v35, %v1487_v53  ;;  %v1547_v21 = vmul.f32 2.0, %v1491_v35  ;;  %v1559_v28 = vmul.f32 %v1491_v35, %v1491_v35 }
 0x1ad   : > { %v3718_v36 = vmul.f32 %v1492_v14, %v1173_v37  ;;  %v3720_v18 = vmul.f32 %v1492_v14, %v1488_v12  ;;  %v1548_v17 = vmul.f32 2.0, %v1492_v14  ;;  %v1560_v29 = vmul.f32 %v1492_v14, %v1492_v14 }
 0x1ae   : > { %v1551_v43 = vmul.f32 %v1547_v21, %v1248_v13  ;;  %v1563_v1 = vmul.f32 729.0, %v1559_v28 }
 0x1af   : > { %v1552_v53 = vmul.f32 %v1548_v17, %v1250_v6  ;;  %v1564_v20 = vmul.f32 729.0, %v1560_v29 }
 0x1d4   : > { %v1319_v46 = vpop.f32.mrb[4].mxu0  ;;  %v1396_v32 = vpop.f32.mrb[4].mxu1 }
 0x1d5   : > { %v1529_v7 = vsub.f32 %v1319_v46, %v1525_v27  ;;  %v1553_v23 = vsub.f32 %v1396_v32, %v1549_v42  ;;  %v1321_v45 = vpop.f32.mrb[5].mxu0  ;;  %v1398_v31 = vpop.f32.mrb[5].mxu1 }
 0x1d6   : > { %v1530_v26 = vsub.f32 %v1321_v45, %v1526_v0  ;;  %v1554_v38 = vsub.f32 %v1398_v31, %v1550_v47 }
 0x1d7   : > { %v1541_v59 = vadd.f32 %v1537_v55, %v1529_v7  ;;  %v1565_v48 = vadd.f32 %v1561_v56, %v1553_v23 }
 0x1d8   : > { %v1542_v61 = vadd.f32 %v1538_v30, %v1530_v26  ;;  %v1566_v8 = vadd.f32 %v1562_v22, %v1554_v38  ;;  %v1513_v26 = vmul.f32 729.0, %v3704_v33  ;;  %v1515_v22 = vmul.f32 729.0, %v3716_v3 }
 0x1d9   : > { %v1573_v60 = vmul.f32 %v1565_v48, %v1541_v59 }
 0x1da   : > { %v1574_v49 = vmul.f32 %v1566_v8, %v1542_v61 }
 0x1db   : > { %v1577_v32 = vadd.f32 1e-05, %v1573_v60 }
 0x1dc   : > { %v1578_v0 = vadd.f32 1e-05, %v1574_v49 }
 0x1dd   : > { %2221 = vrcp.f32 %v1577_v32 }
 0x1de   : > { %2223 = vrcp.f32 %v1578_v0 }
 0x1e0   : > { %v1325_v2 = vpop.f32.mrb[6].mxu0 }
 0x1e1   : > { %v1531_v58 = vsub.f32 %v1325_v2, %v1527_v41  ;;  %v1327_v15 = vpop.f32.mrb[7].mxu0  ;;  %v4001_v2 = vmov 0.0  }
 0x1e2   : > { %v1532_v54 = vsub.f32 %v1327_v15, %v1528_v4  ;;  %1593 = vst [vmem:[%s263_s17] sm:$0x1] %v4001_v2 }
 0x1e3   : > { %v1543_v19 = vadd.f32 %v1539_v5, %v1531_v58 }
 0x1e4   : > { %v1544_v51 = vadd.f32 %v1540_v44, %v1532_v54 }
 0x1e6   : > { %v1402_v40 = vpop.f32.mrb[6].mxu1 }
 0x1e7   : > { %v1555_v12 = vsub.f32 %v1402_v40, %v1551_v43  ;;  %v1404_v11 = vpop.f32.mrb[7].mxu1 }
 0x1e8   : > { %v1556_v27 = vsub.f32 %v1404_v11, %v1552_v53 }
 0x1e9   : > { %v1567_v42 = vadd.f32 %v1563_v1, %v1555_v12  ;;  %v1594_v29 = vld [vmem:[%s263_s17] sm:$0x1] }
 0x1ea   : > { %v1568_v35 = vadd.f32 %v1564_v20, %v1556_v27 }
 0x1eb   : > { %v1575_v37 = vmul.f32 %v1567_v42, %v1543_v19 }
 0x1ec   : > { %v1576_v46 = vmul.f32 %v1568_v35, %v1544_v51 }
 0x1ed   : > { %v1579_v47 = vadd.f32 1e-05, %v1575_v37 }
 0x1ee   : > { %v1580_v14 = vadd.f32 1e-05, %v1576_v46 }
 0x1ef   : > { %2225 = vrcp.f32 %v1579_v47 }
 0x1f0   : > { %2227 = vrcp.f32 %v1580_v14 }
 0x214   : > { %v1473_v13 = vpop.f32.mrb[8].mxu0 }
 0x215   : > { %v1497_v7 = vsub.f32 %v1473_v13, %v3702_v39  ;;  %v1479_v6 = vpop.f32.mrb[8].mxu1  ;;  %v1475_v55 = vpop.f32.mrb[9].mxu0  ;;  %v1514_v39 = vmul.f32 729.0, %v3708_v50 }
 0x216   : > { %v1499_v23 = vsub.f32 %v1479_v6, %v3714_v10  ;;  %v1498_v56 = vsub.f32 %v1475_v55, %v3706_v63  ;;  %v1481_v45 = vpop.f32.mrb[9].mxu1  ;;  %v1516_v63 = vmul.f32 729.0, %v3720_v18 }
 0x217   : > { %v1505_v31 = vsub.f32 %v1497_v7, %v3698_v24  ;;  %v1500_v30 = vsub.f32 %v1481_v45, %v3718_v36  ;;  %v2222_v24 = vpop.eup %2221 }
 0x218   : > { %v1507_v38 = vsub.f32 %v1499_v23, %v3710_v52  ;;  %v1506_v59 = vsub.f32 %v1498_v56, %v3700_v9  ;;  %v2224_v36 = vpop.eup %2223 }
 0x219   : > { %v1517_v48 = vadd.f32 %v1513_v26, %v1505_v31  ;;  %v1508_v10 = vsub.f32 %v1500_v30, %v3712_v16  ;;  %v2226_v60 = vpop.eup %2225 }
 0x21a   : > { %v1519_v25 = vadd.f32 %v1515_v22, %v1507_v38  ;;  %v1518_v61 = vadd.f32 %v1514_v39, %v1506_v59  ;;  %v2228_v9 = vpop.eup %2227 }
 0x21b   : > { %v1569_v8 = vmul.f32 %v1517_v48, %v1517_v48  ;;  %v1520_v33 = vadd.f32 %v1516_v63, %v1508_v10 }
 0x21c   : > { %v1571_v57 = vmul.f32 %v1519_v25, %v1519_v25  ;;  %v1570_v52 = vmul.f32 %v1518_v61, %v1518_v61 }
 0x21d   : > { %v1572_v3 = vmul.f32 %v1520_v33, %v1520_v33  ;;  %v1582_v34 = vmul.f32 %v2222_v24, %v1569_v8 }
 0x21e   : > { %v1584_v49 = vmul.f32 %v2224_v36, %v1570_v52  ;;  %v1586_v50 = vmul.f32 %v2226_v60, %v1571_v57 }
 0x21f   : > { %v1588_v62 = vmul.f32 %v2228_v9, %v1572_v3 }
 0x220   : > { %v1595_v16 = vadd.f32 %v1584_v49, %v1582_v34 }
 0x222   : > { %v1596_v41 = vadd.f32 %v1595_v16, %v1586_v50 }
 0x224   : > { %v1597_v18 = vadd.f32 %v1596_v41, %v1588_v62 }
 0x226   : > { %1598 = vadd.xlane.f32.xlu0 %v1597_v18 }
 0x2b3   : > { %v1599_v21 = vpop.xlane.xlu0 %1598 }
 0x2b4   : > { %v1600_v28 = vrot.slane %v1599_v21, 4 }
 0x2b6   : > { %v1601_v4 = vadd.f32 %v1600_v28, %v1599_v21 }
 0x2b8   : > { %v1602_v58 = vrot.slane %v1601_v4, 2 }
 0x2ba   : > { %v1603_v5 = vadd.f32 %v1602_v58, %v1601_v4 }
 0x2bc   : > { %v1604_v15 = vrot.slane %v1603_v5, 1 }
 0x2be   : > { %v1605_v17 = vadd.f32 %v1604_v15, %v1603_v5 }
 0x2c0   : > { %2138 = vpush %v1605_v17 }
 0x2f1   : > { %s2139_s27 = spop %2138 }
 0x2f2   : > { %v1607_v54 = vstv %s2139_s27 }
 0x2f3   : > { %v1608_v44 = vadd.f32 %v1607_v54, %v1594_v29 }
 0x2f5   : > { %1609 = vst [vmem:[%s263_s17] sm:$0x1] %v1608_v44 }
 0x2f6   : > { %2330 = shalt.err (!%p2327_p11)
}
 0x2f7   : > { %s2331_s26 = scalar_lea.hbm %s3740_s14, 16  ;;  %s2335_s23 = scalar_lea.hbm %s3794_s5, 32 }
 0x2f8   : > { %p2332_p9 = scmp.ne.s32.totalorder %s3740_s14, %s2331_s26  ;;  %p2336_p1 = scmp.lt.u32.totalorder %s3740_s14, %s3794_s5 }
 0x2f9   : > { %p2337_p7 = scmp.lt.u32.totalorder %s2335_s23, %s2331_s26  ;;  %p2339_p10 = scmp.lt.u32.totalorder %s2331_s26, %s3740_s14 }
 0x2fa   : > { %p2333_p8 = pnand %p2332_p9, %p4002_p2 }
 0x2fb   : > { %p2338_p13 = por %p2337_p7, %p2336_p1 }
 0x2fc   : > { %p2334_p6 = pneg %p2333_p8 }
 0x2fd   : > { %p2340_p12 = por %p2339_p10, %p2338_p13 }
 0x2ff   : > { %p2341_p0 = pnand %p2340_p12, %p2334_p6 }
 0x301   : > { %2344 = shalt.err (!%p2341_p0)
}
 0x302   : > { %2148 = dma.vmem_to_hbm [thread:$0]  (%p4002_p2), %s3742_s24, 16, %s3740_s14, %s1611_s15  }
 0x303 PF: > { %s1635_s17 = sand.u32 1, %s2383_s18   ;;  %p4003_p4 = scmp.ne.s32.totalorder %s3897_s10, 0 }
 0x304   : > { %p4004_p3 = scmp.ge.s32.totalorder %s2403_s22, 2  ;;  %s1636_s8 = scalar_lea.sflag [#allocation9], %s1635_s17 }
 0x306   : > { %p2162_p5 = pnand %p4004_p3, %p4003_p4 }
 0x308   : > { %2378 = dma.done.wait (!%p2162_p5), %s1636_s8, 16  }
 0x309   : > { %2380 = vsyncadd (!%p2162_p5), %s1636_s8, 4294967280  ;;  %s22_s22 = sadd.s32 1, %s2403_s22   ;;  %s4005_s18 = smov %s2387_s19 }
 0x30a   : > { %p19_p11 = scmp.ge.s32.totalorder %s22_s22, 4   ;;  %s4006_s19 = smov %s2391_s20 }
 0x30b   : > { %s4007_s20 = smov %s2493_s28  ;;  %s4008_s21 = smov %s2399_s3 }
 0x30c   : > { %s4009_s3 = smov %s4011_s4  ;;  %21 = sbr.rel (!%p19_p11) target bundleno = 7 (0x7), region = 100 }
 0x313   :  { %1640 = vsyncpa [#allocation8], 1 }
 0x314   :  { %1642 = vsyncpa [#allocation8 + $0x1], 1 }
 0x315   :  { %1643 = vsyncpa [#allocation11], 1 }
 0x316   :  { %1645 = vsyncpa [#allocation11 + $0x1], 1 }
 0x317   :  { %1646 = vsyncpa [#allocation9], 1 }
 0x318   :  { %1648 = vsyncpa [#allocation9 + $0x1], 1 }
 0x319   :  { %1649 = vsyncmov [#allocation6] }
 0x31c   :  { %s1650_s29 = vpop.sfrf %1649 }
 0x31d   :  { %p1780_p2 = scmp.ne.s32.totalorder %s1650_s29, 0 }
 0x31f   :  { %1654 = shalt.err (%p1780_p2)  }
 0x320   :  { %1656 = vsyncmov [#allocation6 + $0x1] }
 0x323   :  { %s1657_s10 = vpop.sfrf %1656 }
 0x324   :  { %p1781_p9 = scmp.ne.s32.totalorder %s1657_s10, 0 }
 0x326   :  { %1661 = shalt.err (%p1781_p9)  }
 0x327   :  { %1663 = vsyncmov [#allocation6 + $0x2] }
 0x32a   :  { %s1664_s28 = vpop.sfrf %1663 }
 0x32b   :  { %p1782_p8 = scmp.ne.s32.totalorder %s1664_s28, 0 }
 0x32d   :  { %1668 = shalt.err (%p1782_p8)  }
 0x32e   :  { %1670 = vsyncmov [#allocation6 + $0x3] }
 0x331   :  { %s1671_s22 = vpop.sfrf %1670 }
 0x332   :  { %p1783_p6 = scmp.ne.s32.totalorder %s1671_s22, 0 }
 0x334   :  { %1675 = shalt.err (%p1783_p6)  }

</bundles_post_ra>
